<compile_context>
chip_gen: v7x
topology: tpu7x:2x2x1
jax: 0.10.0
libtpu: 0.0.40
codegen_flags: <defaults>
</compile_context>

<pallas_src>
import jax
import jax.numpy as jnp
import numpy as np
from jax.experimental import pallas as pl
from jax.experimental.pallas import tpu as pltpu


def _round_up(x, m):
    return (x + m - 1) // m * m


def _notears_kernel(flag_ref, x_ref, w0t_ref, b0_ref, w1_ref, ssum_ref, b1_ref, out_ref):
    # flag_ref : SMEM int32[1]  scalar prefetch; 1 iff the input is all-binary
    # x_ref    : [TN, D]        batch tile of the input
    # w0t_ref  : [D, TV*H]      pre-transposed layer-0 weights of TV variables
    # b0_ref   : [1, TV*H]      layer-0 biases of TV variables
    # w1_ref   : [1, TV*H]      flat layer-1 weights (one scalar per hidden unit)
    # ssum_ref : [TV*H, TVP]    shared 0/1 block-summation matrix (same for every tile)
    # b1_ref   : [1, TVP]       layer-1 biases (lane-padded)
    # out_ref  : [TN, TVP]      lane-dense output tile (rows = batch, lanes = vars)
    x = x_ref[...]

    # Layer 0: one wide MXU matmul for all TV variables + sigmoid.
    h = jnp.dot(x, w0t_ref[...], preferred_element_type=jnp.float32) + b0_ref[...]
    # NOTE: jax.nn.sigmoid lowers to logistic (EUP exp + divide).  An explicit
    # pl.reciprocal(..., approx=True) form would keep the divide on the EUP but
    # loosens accuracy below the 1e-5 check, so it is not used here.
    h = jax.nn.sigmoid(h)                                         # [TN, TV*H]

    # Layer 1: per-hidden-unit VPU scale, then block-sum on the MXU (replaces the
    # old mostly-zero block-diagonal weight matmul with identical math).
    hw = h * w1_ref[...]
    y = jnp.dot(hw, ssum_ref[...], preferred_element_type=jnp.float32) + b1_ref[...]

    binary = flag_ref[0]

    @pl.when(binary == 1)
    def _():
        out_ref[...] = jax.nn.sigmoid(y).astype(out_ref.dtype)

    @pl.when(binary == 0)
    def _():
        out_ref[...] = y.astype(out_ref.dtype)


def _vmem_budget_bytes():
    """Generation-aware scoped-VMEM budget with headroom for Mosaic scratch."""
    cap = 64 * 1024 * 1024  # conservative fallback (v7x physical VMEM per core)
    try:
        cap = int(pltpu.get_tpu_info().vmem_capacity_bytes)
    except Exception:
        pass
    return max(16 << 20, min(cap * 3 // 4, 100 << 20))


def _pick_tiles(n, d, h, budget, in_itemsize):
    """Pick (tn, tv, tvp) under the VMEM budget, assuming double-buffered blocks."""
    f32 = 4
    if d > 128 and d % 128 == 0:
        tv = 128
        while (tv * 2 <= d and d % (tv * 2) == 0
               and 2 * d * (2 * tv) * h * in_itemsize <= budget // 2   # W0^T block
               and (2 * tv) * h * (2 * tv) * f32 <= budget // 8):       # summation block
            tv *= 2
        tvp = tv
    else:
        tv, tvp = d, _round_up(d, 128)
    th = tv * h
    # Fixed (batch-invariant) blocks: W0^T, summation matrix, biases, flat w1.
    fixed = 2 * d * th * in_itemsize + 2 * th * tvp * f32 + 4 * (2 * th + tvp) * f32
    rem = max(budget - fixed, 2 << 20)
    # Streamed per-row cost: x + out tiles (double-buffered) + live h / h*w1 values.
    per_row = 2 * d * in_itemsize + 2 * tvp * f32 + 2 * th * f32
    tn = max(8, min(1024, rem // per_row // 8 * 8))
    tn = min(tn, _round_up(n, 8))
    return tn, tv, tvp


def notears_mlp_forward(x, w0, b0, w1, b1, *, tn=None, tv=None, is_binary=None,
                        use_bf16=False):
    """x: [N, D] float32.  Stacked per-variable parameters:
         w0 [D, H, D], b0 [D, 1, H], w1 [D, 1, H], b1 [D, 1, 1].
       Returns [N, D] float32, matching NotearsMLP.forward with dims = [D, H, 1]."""
    n, d = x.shape
    hdim = w0.shape[1]
    f32 = jnp.float32
    in_dtype = jnp.bfloat16 if use_bf16 else f32

    budget = _vmem_budget_bytes()
    a_tn, a_tv, _ = _pick_tiles(n, d, hdim, budget, jnp.dtype(in_dtype).itemsize)
    tn = a_tn if tn is None else tn
    tv = a_tv if tv is None else tv
    assert tn % 8 == 0, "tn must be a multiple of 8"
    assert d % tv == 0, "tv must divide d"
    tvp = tv if tv % 128 == 0 else _round_up(tv, 128)
    n_vt = d // tv
    assert n_vt == 1 or tv % 128 == 0, "multi-tile variable axis needs tv % 128 == 0"
    th = tv * hdim
    n_pad = _round_up(n, tn)
    n_bt = n_pad // tn
    dp = n_vt * tvp

    # "All entries in {0,1}" flag, prefetched into SMEM.  Callers that already know
    # can pass is_binary to skip the extra full pass over x.
    if is_binary is None:
        flag = jnp.all((x == 0) | (x == 1)).astype(jnp.int32).reshape(1)
    else:
        flag = jnp.full((1,), int(bool(is_binary)), jnp.int32)

    # --- One-time parameter re-layout (plain XLA, outside the kernel). ---
    # W0^T: [D_in, D*H]; column block i*H:(i+1)*H is W0_i^T (no in-kernel transpose).
    w0t = jnp.transpose(w0, (2, 0, 1)).reshape(d, d * hdim).astype(in_dtype)
    b0f = b0.reshape(1, d * hdim).astype(f32)
    w1f = w1.reshape(1, d * hdim).astype(f32)            # flat layer-1 weights
    b1f = b1.reshape(1, d).astype(f32)
    if dp != d:                                          # only happens when n_vt == 1
        b1f = jnp.zeros((1, dp), f32).at[:, :d].set(b1f)
    # Shared 0/1 block-summation matrix [TV*H, TVP]: S[v*H + k, v] = 1.
    eye_pad = jnp.zeros((tv, tvp), f32).at[:, :tv].set(jnp.eye(tv, dtype=f32))
    s_sum = jnp.repeat(eye_pad, hdim, axis=0)

    x_p = x.astype(in_dtype)
    if n_pad != n:
        x_p = jnp.pad(x_p, ((0, n_pad - n), (0, 0)))

    # --- Grid order: restream the cheaper operand. ---
    # vars-outer restreams x (n_vt-1 extra passes); batch-outer restreams W0^T.
    vars_outer = (n_vt - 1) * n_pad * d <= (n_bt - 1) * d * d * hdim
    if vars_outer:
        grid = (n_vt, n_bt)
        x_map = lambda vj, bi, _flag: (bi, 0)
        w_map = lambda vj, bi, _flag: (0, vj)
        s_map = lambda vj, bi, _flag: (0, 0)
        o_map = lambda vj, bi, _flag: (bi, vj)
    else:
        grid = (n_bt, n_vt)
        x_map = lambda bi, vj, _flag: (bi, 0)
        w_map = lambda bi, vj, _flag: (0, vj)
        s_map = lambda bi, vj, _flag: (0, 0)
        o_map = lambda bi, vj, _flag: (bi, vj)

    out_full = pl.pallas_call(
        _notears_kernel,
        out_shape=jax.ShapeDtypeStruct((n_pad, dp), f32),
        grid_spec=pltpu.PrefetchScalarGridSpec(
            num_scalar_prefetch=1,
            grid=grid,
            in_specs=[
                pl.BlockSpec((tn, d), x_map),       # x tile
                pl.BlockSpec((d, th), w_map),       # W0^T block
                pl.BlockSpec((1, th), w_map),       # b0 block
                pl.BlockSpec((1, th), w_map),       # flat w1 block
                pl.BlockSpec((th, tvp), s_map),     # shared summation matrix
                pl.BlockSpec((1, tvp), w_map),      # b1 block (lane-padded)
            ],
            out_specs=pl.BlockSpec((tn, tvp), o_map),
        ),
        compiler_params=pltpu.CompilerParams(
            dimension_semantics=("parallel", "parallel"),
            vmem_limit_bytes=budget,
        ),
    )(flag, x_p, w0t, b0f, w1f, s_sum, b1f)

    return out_full[:n, :d]


def _ref_forward(x, w0, b0, w1, b1):
    """Pure-JAX reference mirroring NotearsMLP.forward."""
    h = jax.nn.sigmoid(jnp.einsum('nd,ihd->inh', x, w0) + b0)   # [D, N, H]
    y = jnp.einsum('inh,ioh->ino', h, w1) + b1                  # [D, N, 1]
    binary = jnp.all((x == 0) | (x == 1))
    y = jnp.where(binary, jax.nn.sigmoid(y), y)
    return y[:, :, 0].T                                         # [N, D]


def init_params(key, d, hidden):
    """Deterministic init matching NotearsMLP.__init__ semantics: PyTorch-Linear-style
    uniform init; layer-0 biases zeroed; layer-0 weight column i of sub-network i
    zeroed (no self-loop)."""
    k0, k1, k2 = jax.random.split(key, 3)
    bound0 = 1.0 / np.sqrt(d)
    bound1 = 1.0 / np.sqrt(hidden)
    w0 = jax.random.uniform(k0, (d, hidden, d), jnp.float32, -bound0, bound0)
    w0 = w0 * (1.0 - jnp.eye(d, dtype=jnp.float32)[:, None, :])
    b0 = jnp.zeros((d, 1, hidden), jnp.float32)
    w1 = jax.random.uniform(k1, (d, 1, hidden), jnp.float32, -bound1, bound1)
    b1 = jax.random.uniform(k2, (d, 1, 1), jnp.float32, -bound1, bound1)
    return w0, b0, w1, b1


if __name__ == "__main__":
    key = jax.random.PRNGKey(0)
    kx, kp, kx2, kp2 = jax.random.split(key, 4)

    # --- Config 1: canonical small NOTEARS-MLP (dims = [16, 16, 1]); awkward batch
    # size exercises batch padding and lane-padding of the D=16 output to 128. ---
    N, D, H = 250, 16, 16
    x = jax.random.normal(kx, (N, D), dtype=jnp.float32)
    w0, b0, w1, b1 = init_params(kp, D, H)
    ref = _ref_forward(x, w0, b0, w1, b1)

    out = jax.block_until_ready(notears_mlp_forward(x, w0, b0, w1, b1))  # single grid step
    assert out.shape == (N, D)
    np.testing.assert_allclose(np.asarray(out), np.asarray(ref), atol=1e-5, rtol=1e-5)

    # Multi-step batch grid (tn=64 -> 4 batch tiles over the padded 256 rows).
    out2 = jax.block_until_ready(notears_mlp_forward(x, w0, b0, w1, b1, tn=64))
    np.testing.assert_allclose(np.asarray(out2), np.asarray(ref), atol=1e-5, rtol=1e-5)

    # Binary-input branch (final sigmoid), both auto-detected and statically passed.
    xb = (x > 0).astype(jnp.float32)
    refb = _ref_forward(xb, w0, b0, w1, b1)
    outb = jax.block_until_ready(notears_mlp_forward(xb, w0, b0, w1, b1))
    np.testing.assert_allclose(np.asarray(outb), np.asarray(refb), atol=1e-5, rtol=1e-5)
    outb2 = jax.block_until_ready(notears_mlp_forward(xb, w0, b0, w1, b1, is_binary=True))
    np.testing.assert_allclose(np.asarray(outb2), np.asarray(refb), atol=1e-5, rtol=1e-5)

    # --- Config 2: D a multiple of 128 with two variable tiles (exercises the
    # multi-tile variable axis, lane-dense unpadded output, and the batch-outer
    # grid-order branch). ---
    N2, D2, H2 = 64, 256, 8
    x2 = jax.random.normal(kx2, (N2, D2), dtype=jnp.float32)
    p2 = init_params(kp2, D2, H2)
    ref3 = _ref_forward(x2, *p2)
    out3 = jax.block_until_ready(notears_mlp_forward(x2, *p2, tv=128))
    np.testing.assert_allclose(np.asarray(out3), np.asarray(ref3), atol=2e-5, rtol=2e-5)

    print("KERNEL_OK")
</pallas_src>

<mosaic_0001>
module attributes {stable_mosaic.version = 11 : i64} {
  func.func @_notears_kernel(%arg0: i32, %arg1: i32, %arg2: memref<1xi32, #tpu.memory_space<smem>>, %arg3: memref<256x16xf32, #tpu.memory_space<vmem>>, %arg4: memref<16x256xf32, #tpu.memory_space<vmem>>, %arg5: memref<1x256xf32, #tpu.memory_space<vmem>>, %arg6: memref<1x256xf32, #tpu.memory_space<vmem>>, %arg7: memref<256x128xf32, #tpu.memory_space<vmem>>, %arg8: memref<1x128xf32, #tpu.memory_space<vmem>>, %arg9: memref<256x128xf32, #tpu.memory_space<vmem>>) attributes {dimension_semantics = [#tpu.dimension_semantics<parallel>, #tpu.dimension_semantics<parallel>], iteration_bounds = array<i64: 1, 1>, scalar_prefetch = 1 : i64, scratch_operands = 0 : i64, tpu.core_type = #tpu.core_type<tc>, window_params = [{transform_indices = @transform_0, window_bounds = array<i64: 256, 16>}, {transform_indices = @transform_1, window_bounds = array<i64: 16, 256>}, {transform_indices = @transform_2, window_bounds = array<i64: 1, 256>}, {transform_indices = @transform_3, window_bounds = array<i64: 1, 256>}, {pipeline_mode = #tpu.pipeline_mode<synchronous>, transform_indices = @transform_4, window_bounds = array<i64: 256, 128>}, {transform_indices = @transform_5, window_bounds = array<i64: 1, 128>}, {transform_indices = @transform_6, window_bounds = array<i64: 256, 128>}]} {
    %c0 = arith.constant 0 : index
    %c0_0 = arith.constant 0 : index
    %0 = vector.load %arg3[%c0, %c0_0] : memref<256x16xf32, #tpu.memory_space<vmem>>, vector<256x16xf32>
    %c0_1 = arith.constant 0 : index
    %c0_2 = arith.constant 0 : index
    %1 = vector.load %arg4[%c0_1, %c0_2] : memref<16x256xf32, #tpu.memory_space<vmem>>, vector<16x256xf32>
    %cst = arith.constant dense<0.000000e+00> : vector<256x256xf32>
    %2 = tpu.matmul %0, %1, %cst {dimension_numbers = #tpu.dot_dimension_numbers<[1], [0], [0], [1], [0, 0, 1, 1], [], []>} : vector<256x16xf32>, vector<16x256xf32>, vector<256x256xf32> -> vector<256x256xf32>
    %c0_3 = arith.constant 0 : index
    %c0_4 = arith.constant 0 : index
    %3 = vector.load %arg5[%c0_3, %c0_4] : memref<1x256xf32, #tpu.memory_space<vmem>>, vector<1x256xf32>
    %4 = vector.broadcast %3 : vector<1x256xf32> to vector<256x256xf32>
    %5 = arith.addf %2, %4 : vector<256x256xf32>
    %6 = arith.negf %5 : vector<256x256xf32>
    %7 = math.exp %6 : vector<256x256xf32>
    %cst_5 = arith.constant 1.000000e+00 : f32
    %8 = vector.broadcast %cst_5 : f32 to vector<256x256xf32>
    %9 = arith.addf %8, %7 : vector<256x256xf32>
    %10 = arith.divf %8, %9 : vector<256x256xf32>
    %c0_6 = arith.constant 0 : index
    %c0_7 = arith.constant 0 : index
    %11 = vector.load %arg6[%c0_6, %c0_7] : memref<1x256xf32, #tpu.memory_space<vmem>>, vector<1x256xf32>
    %12 = vector.broadcast %11 : vector<1x256xf32> to vector<256x256xf32>
    %13 = arith.mulf %10, %12 : vector<256x256xf32>
    %c0_8 = arith.constant 0 : index
    %c0_9 = arith.constant 0 : index
    %14 = vector.load %arg7[%c0_8, %c0_9] : memref<256x128xf32, #tpu.memory_space<vmem>>, vector<256x128xf32>
    %cst_10 = arith.constant dense<0.000000e+00> : vector<256x128xf32>
    %15 = tpu.matmul %13, %14, %cst_10 {dimension_numbers = #tpu.dot_dimension_numbers<[1], [0], [0], [1], [0, 0, 1, 1], [], []>} : vector<256x256xf32>, vector<256x128xf32>, vector<256x128xf32> -> vector<256x128xf32>
    %c0_11 = arith.constant 0 : index
    %c0_12 = arith.constant 0 : index
    %16 = vector.load %arg8[%c0_11, %c0_12] : memref<1x128xf32, #tpu.memory_space<vmem>>, vector<1x128xf32>
    %17 = vector.broadcast %16 : vector<1x128xf32> to vector<256x128xf32>
    %18 = arith.addf %15, %17 : vector<256x128xf32>
    %c0_13 = arith.constant 0 : index
    %19 = memref.load %arg2[%c0_13] : memref<1xi32, #tpu.memory_space<smem>>
    %c1_i32 = arith.constant 1 : i32
    %20 = arith.cmpi eq, %19, %c1_i32 : i32
    %21 = arith.extui %20 : i1 to i32
    %c0_i32 = arith.constant 0 : i32
    %22 = arith.cmpi ne, %21, %c0_i32 : i32
    scf.if %22 {
      %26 = arith.negf %18 : vector<256x128xf32>
      %27 = math.exp %26 : vector<256x128xf32>
      %cst_16 = arith.constant 1.000000e+00 : f32
      %28 = vector.broadcast %cst_16 : f32 to vector<256x128xf32>
      %29 = arith.addf %28, %27 : vector<256x128xf32>
      %30 = arith.divf %28, %29 : vector<256x128xf32>
      %c0_17 = arith.constant 0 : index
      %c0_18 = arith.constant 0 : index
      %31 = vector.load %arg9[%c0_17, %c0_18] : memref<256x128xf32, #tpu.memory_space<vmem>>, vector<256x128xf32>
      tpu.vector_store %arg9[%c0_17, %c0_18], %30 {strides = array<i32>} : memref<256x128xf32, #tpu.memory_space<vmem>>, vector<256x128xf32>,
    } else {
    }
    %c0_i32_14 = arith.constant 0 : i32
    %23 = arith.cmpi eq, %19, %c0_i32_14 : i32
    %24 = arith.extui %23 : i1 to i32
    %c0_i32_15 = arith.constant 0 : i32
    %25 = arith.cmpi ne, %24, %c0_i32_15 : i32
    scf.if %25 {
      %c0_16 = arith.constant 0 : index
      %c0_17 = arith.constant 0 : index
      %26 = vector.load %arg9[%c0_16, %c0_17] : memref<256x128xf32, #tpu.memory_space<vmem>>, vector<256x128xf32>
      tpu.vector_store %arg9[%c0_16, %c0_17], %18 {strides = array<i32>} : memref<256x128xf32, #tpu.memory_space<vmem>>, vector<256x128xf32>,
    } else {
    }
    return
  }
  func.func @transform_0(%arg0: i32, %arg1: i32, %arg2: memref<1xi32, #tpu.memory_space<smem>>) -> (i32, i32) {
    %c0_i32 = arith.constant 0 : i32
    %c0_i32_0 = arith.constant 0 : i32
    return %arg1, %c0_i32 : i32, i32
  }
  func.func @transform_1(%arg0: i32, %arg1: i32, %arg2: memref<1xi32, #tpu.memory_space<smem>>) -> (i32, i32) {
    %c0_i32 = arith.constant 0 : i32
    %c0_i32_0 = arith.constant 0 : i32
    return %c0_i32, %arg0 : i32, i32
  }
  func.func @transform_2(%arg0: i32, %arg1: i32, %arg2: memref<1xi32, #tpu.memory_space<smem>>) -> (i32, i32) {
    %c0_i32 = arith.constant 0 : i32
    %c0_i32_0 = arith.constant 0 : i32
    return %c0_i32, %arg0 : i32, i32
  }
  func.func @transform_3(%arg0: i32, %arg1: i32, %arg2: memref<1xi32, #tpu.memory_space<smem>>) -> (i32, i32) {
    %c0_i32 = arith.constant 0 : i32
    %c0_i32_0 = arith.constant 0 : i32
    return %c0_i32, %arg0 : i32, i32
  }
  func.func @transform_4(%arg0: i32, %arg1: i32, %arg2: memref<1xi32, #tpu.memory_space<smem>>) -> (i32, i32) {
    %c0_i32 = arith.constant 0 : i32
    %c0_i32_0 = arith.constant 0 : i32
    %c0_i32_1 = arith.constant 0 : i32
    return %c0_i32, %c0_i32_0 : i32, i32
  }
  func.func @transform_5(%arg0: i32, %arg1: i32, %arg2: memref<1xi32, #tpu.memory_space<smem>>) -> (i32, i32) {
    %c0_i32 = arith.constant 0 : i32
    %c0_i32_0 = arith.constant 0 : i32
    return %c0_i32, %arg0 : i32, i32
  }
  func.func @transform_6(%arg0: i32, %arg1: i32, %arg2: memref<1xi32, #tpu.memory_space<smem>>) -> (i32, i32) {
    %c0_i32 = arith.constant 0 : i32
    return %arg1, %arg0 : i32, i32
  }
}

</mosaic_0001>

<bundles_post_ra>
// kernel: tpu_custom_call.1
= control target key start
LH: loop header
LB: loop body
LE: loop exit
PB: predicated region body
PF: predicated region fallthrough
CT: control target
= control target key end

     0   :  { %13 = vsyncpa [#allocation5], 0  ;;  %v2061_v5 = vmov 0.0   ;;  %vm74_vm0 = vcmask 130048   ;;  %v2062_v8 = vmov 0.0|0.0   ;;  %s2743_s0 = inlined_call_operand.<no memory space> [shape: s32[1], index: 0, kind: input, shape index: {}]   ;;  %s2744_s1 = inlined_call_operand.vmem [shape: f32[256,16], index: 1, kind: input, shape index: {}]   ;;  %s2745_s2 = inlined_call_operand.vmem [shape: f32[16,256], index: 2, kind: input, shape index: {}]   ;;  %s2746_s3 = inlined_call_operand.vmem [shape: f32[1,256], index: 3, kind: input, shape index: {}]   ;;  %s2747_s4 = inlined_call_operand.vmem [shape: f32[1,256], index: 4, kind: input, shape index: {}]   ;;  %s2748_s5 = inlined_call_operand.vmem [shape: f32[256,128], index: 5, kind: input, shape index: {}]   ;;  %s2749_s6 = inlined_call_operand.vmem [shape: f32[1,128], index: 6, kind: input, shape index: {}]   ;;  %s2750_s7 = inlined_call_operand.hbm [shape: f32[256,128], index: 7, kind: output, shape index: {}]  }
   0x1   :  { %v59_v0 = vld [vmem:[%s2745_s2 + $0x8] sm:$0xff]  ;;  %v61_v1 = vld [vmem:[%s2745_s2 + $0x18] sm:$0xff]  ;;  %v58_v3 = vld [vmem:[%s2745_s2] sm:$0xff]  ;;  %235 = vmatprep.mubr.f32.mxu0 %v2061_v5  ;;  %1616 = vmatprep.subr.bf16.mxu1 %v2062_v8  ;;  %p1530_p0 = scmp.ne.s32.totalorder %s2743_s0, 1 }
   0x2   :  { %v1564_v2 = vpack.c.bf16 %v61_v1, %v59_v0  ;;  %v60_v4 = vld [vmem:[%s2745_s2 + $0x10] sm:$0xff]  ;;  %v26_v7 = vld [vmem:[%s2744_s1] sm:$0xff]  ;;  %v27_v9 = vld [vmem:[%s2744_s1 + $0x8] sm:$0xff] }
   0x3   :  { %v1566_v6 = vpack.c.bf16 %v60_v4, %v58_v3  ;;  %v28_v10 = vld [vmem:[%s2744_s1 + $0x10] sm:$0xff]  ;;  %v888_v11 = vld [vmem:[%s2748_s5] sm:$0xff]  ;;  %v889_v12 = vld [vmem:[%s2748_s5 + $0x8] sm:$0xff] }
   0x4   :  { %1565 = vmatprep.subr.bf16.mxu0 %v1564_v2  ;;  %v1569_v13 = vpack.c.bf16 %v889_v12, %v888_v11  ;;  %v890_v14 = vld [vmem:[%s2748_s5 + $0x10] sm:$0xff]  ;;  %v891_v15 = vld [vmem:[%s2748_s5 + $0x18] sm:$0xff]  ;;  %v892_v18 = vld [vmem:[%s2748_s5 + $0x20] sm:$0xff] }
   0x5   :  { %1567 = vmatpush1.bf16.msra.mxu0 %v1566_v6  ;;  %v29_v16 = vld [vmem:[%s2744_s1 + $0x18] sm:$0xff]  ;;  %v1572_v17 = vpack.c.bf16 %v891_v15, %v890_v14  ;;  %v893_v19 = vld [vmem:[%s2748_s5 + $0x28] sm:$0xff]  ;;  %v30_v20 = vld [vmem:[%s2744_s1 + $0x20] sm:$0xff] }
   0x6   :  { %1568 = vmatprep.subr.bf16.mxu0 %v2062_v8  ;;  %1632 = vmatpush1.bf16.msra.mxu1 %v1569_v13  ;;  %v1575_v21 = vpack.c.bf16 %v893_v19, %v892_v18  ;;  %v894_v22 = vld [vmem:[%s2748_s5 + $0x30] sm:$0xff]  ;;  %v895_v23 = vld [vmem:[%s2748_s5 + $0x38] sm:$0xff]  ;;  %v31_v24 = vld [vmem:[%s2744_s1 + $0x28] sm:$0xff] }
   0x7   :  { %1617 = vmatprep.subr.bf16.mxu1 %v2062_v8  ;;  %v1578_v25 = vpack.c.bf16 %v895_v23, %v894_v22  ;;  %v896_v26 = vld [vmem:[%s2748_s5 + $0x40] sm:$0xff]  ;;  %v897_v27 = vld [vmem:[%s2748_s5 + $0x48] sm:$0xff]  ;;  %v32_v28 = vld [vmem:[%s2744_s1 + $0x30] sm:$0xff] }
   0x8   :  { %1433 = vmatmul.mubr.msk.f32.vlgmr.msra.gmra.mrb[0].mxu0 %vm74_vm0, %v26_v7  ;;  %v1581_v29 = vpack.c.bf16 %v897_v27, %v896_v26  ;;  %v898_v30 = vld [vmem:[%s2748_s5 + $0x50] sm:$0xff]  ;;  %v899_v31 = vld [vmem:[%s2748_s5 + $0x58] sm:$0xff]  ;;  %v900_v34 = vld [vmem:[%s2748_s5 + $0x60] sm:$0xff] }
   0x9   :  { %241 = vmatprep.mubr.f32.mxu0 %v2061_v5  ;;  %1570 = vmatpush1.bf16.msra.mxu0 %v1569_v13  ;;  %v33_v32 = vld [vmem:[%s2744_s1 + $0x38] sm:$0xff]  ;;  %v1584_v33 = vpack.c.bf16 %v899_v31, %v898_v30  ;;  %v901_v35 = vld [vmem:[%s2748_s5 + $0x68] sm:$0xff]  ;;  %v34_v36 = vld [vmem:[%s2744_s1 + $0x40] sm:$0xff] }
   0xa   :  { %1571 = vmatprep.subr.bf16.mxu0 %v2062_v8  ;;  %1633 = vmatpush1.bf16.msra.mxu1 %v1572_v17  ;;  %v1587_v37 = vpack.c.bf16 %v901_v35, %v900_v34  ;;  %v902_v38 = vld [vmem:[%s2748_s5 + $0x70] sm:$0xff]  ;;  %v903_v39 = vld [vmem:[%s2748_s5 + $0x78] sm:$0xff]  ;;  %v35_v40 = vld [vmem:[%s2744_s1 + $0x48] sm:$0xff] }
   0xb   :  { %1618 = vmatprep.subr.bf16.mxu1 %v2062_v8  ;;  %v1590_v41 = vpack.c.bf16 %v903_v39, %v902_v38  ;;  %v36_v42 = vld [vmem:[%s2744_s1 + $0x50] sm:$0xff]  ;;  %v37_v43 = vld [vmem:[%s2744_s1 + $0x58] sm:$0xff]  ;;  %v38_v44 = vld [vmem:[%s2744_s1 + $0x60] sm:$0xff] }
   0xc   :  { %1434 = vmatmul.mubr.msk.f32.gmra.mrb[2].mxu0 %vm74_vm0, %v27_v9  ;;  %v39_v45 = vld [vmem:[%s2744_s1 + $0x68] sm:$0xff]  ;;  %v40_v46 = vld [vmem:[%s2744_s1 + $0x70] sm:$0xff]  ;;  %v41_v47 = vld [vmem:[%s2744_s1 + $0x78] sm:$0xff] }
   0xd   :  { %247 = vmatprep.mubr.f32.mxu0 %v2061_v5  ;;  %1573 = vmatpush1.bf16.msra.mxu0 %v1572_v17  ;;  %v42_v48 = vld [vmem:[%s2744_s1 + $0x80] sm:$0xff]  ;;  %v43_v49 = vld [vmem:[%s2744_s1 + $0x88] sm:$0xff]  ;;  %v44_v50 = vld [vmem:[%s2744_s1 + $0x90] sm:$0xff] }
   0xe   :  { %1574 = vmatprep.subr.bf16.mxu0 %v2062_v8  ;;  %1634 = vmatpush1.bf16.msra.mxu1 %v1575_v21  ;;  %v45_v51 = vld [vmem:[%s2744_s1 + $0x98] sm:$0xff]  ;;  %v46_v52 = vld [vmem:[%s2744_s1 + $0xa0] sm:$0xff]  ;;  %v47_v53 = vld [vmem:[%s2744_s1 + $0xa8] sm:$0xff] }
   0xf   :  { %1619 = vmatprep.subr.bf16.mxu1 %v2062_v8  ;;  %v904_v54 = vld [vmem:[%s2748_s5 + $0x80] sm:$0xff]  ;;  %v905_v55 = vld [vmem:[%s2748_s5 + $0x88] sm:$0xff]  ;;  %v48_v57 = vld [vmem:[%s2744_s1 + $0xb0] sm:$0xff] }
  0x10   :  { %1435 = vmatmul.mubr.msk.f32.gmra.mrb[4].mxu0 %vm74_vm0, %v28_v10  ;;  %v1593_v56 = vpack.c.bf16 %v905_v55, %v904_v54  ;;  %v906_v58 = vld [vmem:[%s2748_s5 + $0x90] sm:$0xff]  ;;  %v907_v59 = vld [vmem:[%s2748_s5 + $0x98] sm:$0xff]  ;;  %v908_v62 = vld [vmem:[%s2748_s5 + $0xa0] sm:$0xff] }
  0x11   :  { %253 = vmatprep.mubr.f32.mxu0 %v2061_v5  ;;  %1576 = vmatpush1.bf16.msra.mxu0 %v1575_v21  ;;  %v1596_v60 = vpack.c.bf16 %v907_v59, %v906_v58  ;;  %v49_v61 = vld [vmem:[%s2744_s1 + $0xb8] sm:$0xff]  ;;  %v909_v63 = vld [vmem:[%s2748_s5 + $0xa8] sm:$0xff]  ;;  %v50_v1 = vld [vmem:[%s2744_s1 + $0xc0] sm:$0xff] }
  0x12   :  { %1577 = vmatprep.subr.bf16.mxu0 %v2062_v8  ;;  %1635 = vmatpush1.bf16.msra.mxu1 %v1578_v25  ;;  %v1599_v0 = vpack.c.bf16 %v909_v63, %v908_v62  ;;  %v910_v2 = vld [vmem:[%s2748_s5 + $0xb0] sm:$0xff]  ;;  %v911_v3 = vld [vmem:[%s2748_s5 + $0xb8] sm:$0xff]  ;;  %v51_v4 = vld [vmem:[%s2744_s1 + $0xc8] sm:$0xff] }
  0x13   :  { %1620 = vmatprep.subr.bf16.mxu1 %v2062_v8  ;;  %v1602_v6 = vpack.c.bf16 %v911_v3, %v910_v2  ;;  %v912_v7 = vld [vmem:[%s2748_s5 + $0xc0] sm:$0xff]  ;;  %v913_v9 = vld [vmem:[%s2748_s5 + $0xc8] sm:$0xff]  ;;  %v52_v10 = vld [vmem:[%s2744_s1 + $0xd0] sm:$0xff] }
  0x14   :  { %1436 = vmatmul.mubr.msk.f32.gmra.mrb[6].mxu0 %vm74_vm0, %v29_v16  ;;  %v1605_v11 = vpack.c.bf16 %v913_v9, %v912_v7  ;;  %v914_v12 = vld [vmem:[%s2748_s5 + $0xd0] sm:$0xff]  ;;  %v915_v13 = vld [vmem:[%s2748_s5 + $0xd8] sm:$0xff]  ;;  %v916_v16 = vld [vmem:[%s2748_s5 + $0xe0] sm:$0xff] }
  0x15   :  { %259 = vmatprep.mubr.f32.mxu0 %v2061_v5  ;;  %1579 = vmatpush1.bf16.msra.mxu0 %v1578_v25  ;;  %v53_v14 = vld [vmem:[%s2744_s1 + $0xd8] sm:$0xff]  ;;  %v1608_v15 = vpack.c.bf16 %v915_v13, %v914_v12  ;;  %v917_v17 = vld [vmem:[%s2748_s5 + $0xe8] sm:$0xff]  ;;  %v54_v18 = vld [vmem:[%s2744_s1 + $0xe0] sm:$0xff] }
  0x16   :  { %1580 = vmatprep.subr.bf16.mxu0 %v2062_v8  ;;  %1636 = vmatpush1.bf16.msra.mxu1 %v1581_v29  ;;  %v1611_v19 = vpack.c.bf16 %v917_v17, %v916_v16  ;;  %v919_v21 = vld [vmem:[%s2748_s5 + $0xf8] sm:$0xff]  ;;  %v55_v22 = vld [vmem:[%s2744_s1 + $0xe8] sm:$0xff]  ;;  %v812_v13 = vld [vmem:[%s2747_s4] sm:$0x3] }
  0x17   :  { %1621 = vmatprep.subr.bf16.mxu1 %v2062_v8  ;;  %v57_v25 = vld [vmem:[%s2744_s1 + $0xf8] sm:$0xff] }
  0x18   :  { %1437 = vmatmul.mubr.msk.f32.gmra.mrb[8].mxu0 %vm74_vm0, %v30_v20  ;;  %v918_v20 = vld [vmem:[%s2748_s5 + $0xf0] sm:$0xff] }
  0x19   :  { %265 = vmatprep.mubr.f32.mxu0 %v2061_v5  ;;  %1582 = vmatpush1.bf16.msra.mxu0 %v1581_v29  ;;  %v1614_v23 = vpack.c.bf16 %v919_v21, %v918_v20 }
  0x1a   :  { %1583 = vmatprep.subr.bf16.mxu0 %v2062_v8  ;;  %1637 = vmatpush1.bf16.msra.mxu1 %v1584_v33 }
  0x1b   :  { %1622 = vmatprep.subr.bf16.mxu1 %v2062_v8 }
  0x1c   :  { %1438 = vmatmul.mubr.msk.f32.gmra.mrb[10].mxu0 %vm74_vm0, %v31_v24  ;;  %v56_v24 = vld [vmem:[%s2744_s1 + $0xf0] sm:$0xff] }
  0x1d   :  { %271 = vmatprep.mubr.f32.mxu0 %v2061_v5  ;;  %1585 = vmatpush1.bf16.msra.mxu0 %v1584_v33 }
  0x1e   :  { %1586 = vmatprep.subr.bf16.mxu0 %v2062_v8  ;;  %1638 = vmatpush1.bf16.msra.mxu1 %v1587_v37 }
  0x1f   :  { %1623 = vmatprep.subr.bf16.mxu1 %v2062_v8 }
  0x20   :  { %1439 = vmatmul.mubr.msk.f32.gmra.mrb[12].mxu0 %vm74_vm0, %v32_v28  ;;  %v62_v28 = vld [vmem:[%s2746_s3] sm:$0x3] }
  0x21   :  { %277 = vmatprep.mubr.f32.mxu0 %v2061_v5  ;;  %1588 = vmatpush1.bf16.msra.mxu0 %v1587_v37 }
  0x22   :  { %1589 = vmatprep.subr.bf16.mxu0 %v2062_v8  ;;  %1639 = vmatpush1.bf16.msra.mxu1 %v1590_v41 }
  0x23   :  { %1624 = vmatprep.subr.bf16.mxu1 %v2062_v8 }
  0x24   :  { %1440 = vmatmul.mubr.msk.f32.gmra.mrb[14].mxu0 %vm74_vm0, %v33_v32 }
  0x25   :  { %283 = vmatprep.mubr.f32.mxu0 %v2061_v5  ;;  %1591 = vmatpush1.bf16.msra.mxu0 %v1590_v41 }
  0x26   :  { %1592 = vmatprep.subr.bf16.mxu0 %v2062_v8  ;;  %1640 = vmatpush1.bf16.msra.mxu1 %v1593_v56 }
  0x27   :  { %1625 = vmatprep.subr.bf16.mxu1 %v2062_v8 }
  0x28   :  { %1441 = vmatmul.mubr.msk.f32.gmra.mrb[16].mxu0 %vm74_vm0, %v34_v36 }
  0x29   :  { %289 = vmatprep.mubr.f32.mxu0 %v2061_v5  ;;  %1594 = vmatpush1.bf16.msra.mxu0 %v1593_v56 }
  0x2a   :  { %1595 = vmatprep.subr.bf16.mxu0 %v2062_v8  ;;  %1641 = vmatpush1.bf16.msra.mxu1 %v1596_v60 }
  0x2b   :  { %1626 = vmatprep.subr.bf16.mxu1 %v2062_v8 }
  0x2c   :  { %1442 = vmatmul.mubr.msk.f32.gmra.mrb[18].mxu0 %vm74_vm0, %v35_v40 }
  0x2d   :  { %295 = vmatprep.mubr.f32.mxu0 %v2061_v5  ;;  %1597 = vmatpush1.bf16.msra.mxu0 %v1596_v60 }
  0x2e   :  { %1598 = vmatprep.subr.bf16.mxu0 %v2062_v8  ;;  %1642 = vmatpush1.bf16.msra.mxu1 %v1599_v0 }
  0x2f   :  { %1627 = vmatprep.subr.bf16.mxu1 %v2062_v8 }
  0x30   :  { %1443 = vmatmul.mubr.msk.f32.gmra.mrb[20].mxu0 %vm74_vm0, %v36_v42 }
  0x31   :  { %301 = vmatprep.mubr.f32.mxu0 %v2061_v5  ;;  %1600 = vmatpush1.bf16.msra.mxu0 %v1599_v0 }
  0x32   :  { %1601 = vmatprep.subr.bf16.mxu0 %v2062_v8  ;;  %1643 = vmatpush1.bf16.msra.mxu1 %v1602_v6 }
  0x33   :  { %1628 = vmatprep.subr.bf16.mxu1 %v2062_v8 }
  0x34   :  { %1444 = vmatmul.mubr.msk.f32.gmra.mrb[22].mxu0 %vm74_vm0, %v37_v43 }
  0x35   :  { %307 = vmatprep.mubr.f32.mxu0 %v2061_v5  ;;  %1603 = vmatpush1.bf16.msra.mxu0 %v1602_v6 }
  0x36   :  { %1604 = vmatprep.subr.bf16.mxu0 %v2062_v8  ;;  %1644 = vmatpush1.bf16.msra.mxu1 %v1605_v11 }
  0x37   :  { %1629 = vmatprep.subr.bf16.mxu1 %v2062_v8 }
  0x38   :  { %1445 = vmatmul.mubr.msk.f32.gmra.mrb[24].mxu0 %vm74_vm0, %v38_v44 }
  0x39   :  { %313 = vmatprep.mubr.f32.mxu0 %v2061_v5  ;;  %1606 = vmatpush1.bf16.msra.mxu0 %v1605_v11 }
  0x3a   :  { %1607 = vmatprep.subr.bf16.mxu0 %v2062_v8  ;;  %1645 = vmatpush1.bf16.msra.mxu1 %v1608_v15 }
  0x3b   :  { %1630 = vmatprep.subr.bf16.mxu1 %v2062_v8 }
  0x3c   :  { %1446 = vmatmul.mubr.msk.f32.gmra.mrb[26].mxu0 %vm74_vm0, %v39_v45 }
  0x3d   :  { %319 = vmatprep.mubr.f32.mxu0 %v2061_v5  ;;  %1609 = vmatpush1.bf16.msra.mxu0 %v1608_v15 }
  0x3e   :  { %1610 = vmatprep.subr.bf16.mxu0 %v2062_v8  ;;  %1646 = vmatpush1.bf16.msra.mxu1 %v1611_v19 }
  0x3f   :  { %1631 = vmatprep.subr.bf16.mxu1 %v2062_v8 }
  0x40   :  { %1447 = vmatmul.mubr.msk.f32.gmra.mrb[28].mxu0 %vm74_vm0, %v40_v46 }
  0x41   :  { %325 = vmatprep.mubr.f32.mxu0 %v2061_v5  ;;  %1612 = vmatpush1.bf16.msra.mxu0 %v1611_v19 }
  0x42   :  { %1613 = vmatprep.subr.bf16.mxu0 %v2062_v8  ;;  %1647 = vmatpush1.bf16.msra.mxu1 %v1614_v23  ;;  %v64_v8 = vlaneseq }
  0x44   :  { %1448 = vmatmul.mubr.msk.f32.gmra.mrb[30].mxu0 %vm74_vm0, %v41_v47  ;;  %v2406_v26 = vshrl.u32 %v64_v8, 7 }
  0x45   :  { %331 = vmatprep.mubr.f32.mxu0 %v2061_v5  ;;  %1615 = vmatpush1.bf16.msra.mxu0 %v1614_v23 }
  0x46   :  { %v66_v27 = vsub.s32 0, %v2406_v26  ;;  %v70_v29 = vsub.s32 1, %v2406_v26 }
  0x48   :  { %1449 = vmatmul.mubr.msk.f32.gmra.mrb[32].mxu0 %vm74_vm0, %v42_v48  ;;  %v2419_v30 = vrot.slane %v62_v28, %v70_v29 }
  0x49   :  { %337 = vmatprep.mubr.f32.mxu0 %v2061_v5 }
  0x4c   :  { %1450 = vmatmul.mubr.msk.f32.gmra.mrb[34].mxu0 %vm74_vm0, %v43_v49 }
  0x4d   :  { %343 = vmatprep.mubr.f32.mxu0 %v2061_v5 }
  0x50   :  { %1451 = vmatmul.mubr.msk.f32.gmra.mrb[36].mxu0 %vm74_vm0, %v44_v50 }
  0x51   :  { %349 = vmatprep.mubr.f32.mxu0 %v2061_v5 }
  0x54   :  { %1452 = vmatmul.mubr.msk.f32.gmra.mrb[38].mxu0 %vm74_vm0, %v45_v51 }
  0x55   :  { %355 = vmatprep.mubr.f32.mxu0 %v2061_v5 }
  0x58   :  { %1453 = vmatmul.mubr.msk.f32.gmra.mrb[40].mxu0 %vm74_vm0, %v46_v52 }
  0x59   :  { %361 = vmatprep.mubr.f32.mxu0 %v2061_v5 }
  0x5c   :  { %1454 = vmatmul.mubr.msk.f32.gmra.mrb[42].mxu0 %vm74_vm0, %v47_v53 }
  0x5d   :  { %367 = vmatprep.mubr.f32.mxu0 %v2061_v5 }
  0x60   :  { %1455 = vmatmul.mubr.msk.f32.gmra.mrb[44].mxu0 %vm74_vm0, %v48_v57 }
  0x61   :  { %373 = vmatprep.mubr.f32.mxu0 %v2061_v5 }
  0x64   :  { %1456 = vmatmul.mubr.msk.f32.gmra.mrb[46].mxu0 %vm74_vm0, %v49_v61 }
  0x65   :  { %379 = vmatprep.mubr.f32.mxu0 %v2061_v5 }
  0x68   :  { %1457 = vmatmul.mubr.msk.f32.gmra.mrb[48].mxu0 %vm74_vm0, %v50_v1 }
  0x69   :  { %385 = vmatprep.mubr.f32.mxu0 %v2061_v5 }
  0x6c   :  { %1458 = vmatmul.mubr.msk.f32.gmra.mrb[50].mxu0 %vm74_vm0, %v51_v4 }
  0x6d   :  { %391 = vmatprep.mubr.f32.mxu0 %v2061_v5 }
  0x70   :  { %1459 = vmatmul.mubr.msk.f32.gmra.mrb[52].mxu0 %vm74_vm0, %v52_v10 }
  0x71   :  { %397 = vmatprep.mubr.f32.mxu0 %v2061_v5 }
  0x74   :  { %1460 = vmatmul.mubr.msk.f32.gmra.mrb[54].mxu0 %vm74_vm0, %v53_v14 }
  0x75   :  { %403 = vmatprep.mubr.f32.mxu0 %v2061_v5 }
  0x78   :  { %1461 = vmatmul.mubr.msk.f32.gmra.mrb[56].mxu0 %vm74_vm0, %v54_v18 }
  0x79   :  { %409 = vmatprep.mubr.f32.mxu0 %v2061_v5 }
  0x7c   :  { %1462 = vmatmul.mubr.msk.f32.gmra.mrb[58].mxu0 %vm74_vm0, %v55_v22  ;;  %v2440_v22 = vrot.slane %v812_v13, %v70_v29 }
  0x7d   :  { %415 = vmatprep.mubr.f32.mxu0 %v2061_v5 }
  0x80   :  { %1463 = vmatmul.mubr.msk.f32.gmra.mrb[60].mxu0 %vm74_vm0, %v56_v24 }
  0x81   :  { %421 = vmatprep.mubr.f32.mxu0 %v2061_v5  ;;  %v2415_v5 = vrot.slane %v62_v28, %v66_v27 }
  0x84   :  { %1464 = vmatmul.mubr.msk.f32.gmra.mrb[62].mxu0 %vm74_vm0, %v57_v25  ;;  %v2444_v25 = vrot.slane %v812_v13, %v66_v27 }
  0xdb   :  { %v237_v31 = vpop.f32.mrb[0].mxu0 }
  0xdc   :  { %v238_v32 = vadd.f32 %v237_v31, %v2415_v5  ;;  %v239_v33 = vpop.f32.mrb[1].mxu0 }
  0xdd   :  { %v240_v34 = vadd.f32 %v239_v33, %v2419_v30 }
  0xde   :  { %v1465_v35 = vmul.f32 -1.442695, %v238_v32 }
  0xdf   :  { %v1466_v36 = vmul.f32 -1.442695, %v240_v34  ;;  %v243_v37 = vpop.f32.mrb[2].mxu0 }
  0xe0   :  { %1653 = vpow2.f32 %v1465_v35  ;;  %v244_v38 = vadd.f32 %v243_v37, %v2415_v5  ;;  %v245_v39 = vpop.f32.mrb[3].mxu0 }
  0xe1   :  { %1655 = vpow2.f32 %v1466_v36  ;;  %v246_v40 = vadd.f32 %v245_v39, %v2419_v30 }
  0xe2   :  { %v1467_v41 = vmul.f32 -1.442695, %v244_v38 }
  0xe3   :  { %v1468_v42 = vmul.f32 -1.442695, %v246_v40  ;;  %v249_v43 = vpop.f32.mrb[4].mxu0 }
  0xe4   :  { %1657 = vpow2.f32 %v1467_v41  ;;  %v250_v44 = vadd.f32 %v249_v43, %v2415_v5  ;;  %v251_v45 = vpop.f32.mrb[5].mxu0 }
  0xe5   :  { %1659 = vpow2.f32 %v1468_v42  ;;  %v252_v46 = vadd.f32 %v251_v45, %v2419_v30 }
  0xe6   :  { %v1469_v47 = vmul.f32 -1.442695, %v250_v44 }
  0xe7   :  { %v1470_v48 = vmul.f32 -1.442695, %v252_v46  ;;  %v255_v49 = vpop.f32.mrb[6].mxu0 }
  0xe8   :  { %1661 = vpow2.f32 %v1469_v47  ;;  %v256_v50 = vadd.f32 %v255_v49, %v2415_v5  ;;  %v257_v51 = vpop.f32.mrb[7].mxu0 }
  0xe9   :  { %1663 = vpow2.f32 %v1470_v48  ;;  %v258_v52 = vadd.f32 %v257_v51, %v2419_v30 }
  0xea   :  { %v1654_v53 = vpop.eup %1653  ;;  %v1471_v54 = vmul.f32 -1.442695, %v256_v50 }
  0xeb   :  { %v1656_v55 = vpop.eup %1655  ;;  %v620_v56 = vadd.f32 1.0, %v1654_v53  ;;  %v1472_v57 = vmul.f32 -1.442695, %v258_v52  ;;  %v261_v58 = vpop.f32.mrb[8].mxu0 }
  0xec   :  { %v621_v59 = vadd.f32 1.0, %v1656_v55  ;;  %1665 = vpow2.f32 %v1471_v54  ;;  %v262_v60 = vadd.f32 %v261_v58, %v2415_v5  ;;  %v263_v61 = vpop.f32.mrb[9].mxu0 }
  0xed   :  { %1667 = vrcp.f32 %v620_v56  ;;  %v264_v62 = vadd.f32 %v263_v61, %v2419_v30 }
  0xee   :  { %v1658_v63 = vpop.eup %1657  ;;  %1669 = vrcp.f32 %v621_v59  ;;  %v1473_v0 = vmul.f32 -1.442695, %v262_v60 }
  0xef   :  { %v1660_v1 = vpop.eup %1659  ;;  %v622_v2 = vadd.f32 1.0, %v1658_v63  ;;  %1671 = vpow2.f32 %v1472_v57  ;;  %v1474_v3 = vmul.f32 -1.442695, %v264_v62  ;;  %v267_v4 = vpop.f32.mrb[10].mxu0 }
  0xf0   :  { %v623_v6 = vadd.f32 1.0, %v1660_v1  ;;  %1673 = vpow2.f32 %v1473_v0  ;;  %v268_v7 = vadd.f32 %v267_v4, %v2415_v5  ;;  %v269_v9 = vpop.f32.mrb[11].mxu0 }
  0xf1   :  { %1675 = vrcp.f32 %v622_v2  ;;  %v270_v10 = vadd.f32 %v269_v9, %v2419_v30 }
  0xf2   :  { %v1662_v11 = vpop.eup %1661  ;;  %1677 = vrcp.f32 %v623_v6  ;;  %v1475_v12 = vmul.f32 -1.442695, %v268_v7 }
  0xf3   :  { %v1664_v14 = vpop.eup %1663  ;;  %v624_v15 = vadd.f32 1.0, %v1662_v11  ;;  %1679 = vpow2.f32 %v1474_v3  ;;  %v1476_v16 = vmul.f32 -1.442695, %v270_v10  ;;  %v273_v17 = vpop.f32.mrb[12].mxu0 }
  0xf4   :  { %v625_v18 = vadd.f32 1.0, %v1664_v14  ;;  %1681 = vpow2.f32 %v1475_v12  ;;  %v274_v19 = vadd.f32 %v273_v17, %v2415_v5  ;;  %v275_v20 = vpop.f32.mrb[13].mxu0 }
  0xf5   :  { %1683 = vrcp.f32 %v624_v15  ;;  %v276_v21 = vadd.f32 %v275_v20, %v2419_v30 }
  0xf6   :  { %v1666_v23 = vpop.eup %1665  ;;  %1685 = vrcp.f32 %v625_v18  ;;  %v1477_v24 = vmul.f32 -1.442695, %v274_v19 }
  0xf7   :  { %v1668_v8 = vpop.eup %1667  ;;  %v626_v28 = vadd.f32 1.0, %v1666_v23  ;;  %1687 = vpow2.f32 %v1476_v16  ;;  %v1478_v31 = vmul.f32 -1.442695, %v276_v21  ;;  %v279_v32 = vpop.f32.mrb[14].mxu0 }
  0xf8   :  { %v1670_v33 = vpop.eup %1669  ;;  %1689 = vpow2.f32 %v1477_v24  ;;  %v280_v34 = vadd.f32 %v279_v32, %v2415_v5  ;;  %v281_v35 = vpop.f32.mrb[15].mxu0  ;;  %v824_v27 = vmul.f32 %v1668_v8, %v2444_v25 }
  0xf9   :  { %v1672_v36 = vpop.eup %1671  ;;  %v282_v29 = vadd.f32 %v281_v35, %v2419_v30  ;;  %v825_v37 = vmul.f32 %v1670_v33, %v2440_v22  ;;  %1691 = vpow2.f32 %v1478_v31 }
  0xfa   :  { %v1674_v38 = vpop.eup %1673  ;;  %v627_v39 = vadd.f32 1.0, %v1672_v36  ;;  %v1479_v26 = vmul.f32 -1.442695, %v280_v34  ;;  %1693 = vrcp.f32 %v626_v28 }
  0xfb   :  { %v1676_v40 = vpop.eup %1675  ;;  %v628_v41 = vadd.f32 1.0, %v1674_v38  ;;  %v1480_v42 = vmul.f32 -1.442695, %v282_v29  ;;  %v285_v43 = vpop.f32.mrb[16].mxu0  ;;  %991 = vmatprep.mubr.f32.mxu0 %v825_v37 }
  0xfc   :  { %v1678_v44 = vpop.eup %1677  ;;  %1695 = vrcp.f32 %v627_v39  ;;  %v286_v45 = vadd.f32 %v285_v43, %v2415_v5  ;;  %v287_v46 = vpop.f32.mrb[17].mxu0  ;;  %992 = vmatmul.mubr.f32.vlgmr.msra.gmra.mrb[64].mxu0 %v824_v27  ;;  %v826_v53 = vmul.f32 %v1676_v40, %v2444_v25 }
  0xfd   :  { %v1680_v47 = vpop.eup %1679  ;;  %1697 = vrcp.f32 %v628_v41  ;;  %v288_v48 = vadd.f32 %v287_v46, %v2419_v30  ;;  %v827_v49 = vmul.f32 %v1678_v44, %v2440_v22 }
  0xfe   :  { %v1682_v50 = vpop.eup %1681  ;;  %v629_v51 = vadd.f32 1.0, %v1680_v47  ;;  %1699 = vpow2.f32 %v1479_v26  ;;  %v1481_v52 = vmul.f32 -1.442695, %v286_v45 }
  0xff   :  { %v1684_v54 = vpop.eup %1683  ;;  %v630_v55 = vadd.f32 1.0, %v1682_v50  ;;  %1701 = vpow2.f32 %v1480_v42  ;;  %v1482_v56 = vmul.f32 -1.442695, %v288_v48  ;;  %v291_v57 = vpop.f32.mrb[18].mxu0  ;;  %996 = vmatprep.mubr.f32.mxu0 %v827_v49 }
 0x100   :  { %v1686_v58 = vpop.eup %1685  ;;  %1703 = vrcp.f32 %v629_v51  ;;  %v292_v59 = vadd.f32 %v291_v57, %v2415_v5  ;;  %v293_v60 = vpop.f32.mrb[19].mxu0  ;;  %997 = vmatmul.mubr.f32.gmra.mrb[66].mxu0 %v826_v53  ;;  %v828_v3 = vmul.f32 %v1684_v54, %v2444_v25 }
 0x101   :  { %v1688_v61 = vpop.eup %1687  ;;  %1705 = vrcp.f32 %v630_v55  ;;  %v294_v62 = vadd.f32 %v293_v60, %v2419_v30  ;;  %v829_v63 = vmul.f32 %v1686_v58, %v2440_v22 }
 0x102   :  { %v1690_v0 = vpop.eup %1689  ;;  %v631_v1 = vadd.f32 1.0, %v1688_v61  ;;  %1707 = vpow2.f32 %v1481_v52  ;;  %v1483_v2 = vmul.f32 -1.442695, %v292_v59 }
 0x103   :  { %v632_v4 = vadd.f32 1.0, %v1690_v0  ;;  %1709 = vpow2.f32 %v1482_v56  ;;  %v297_v6 = vpop.f32.mrb[20].mxu0  ;;  %1001 = vmatprep.mubr.f32.mxu0 %v829_v63  ;;  %v1692_v7 = vpop.eup %1691  ;;  %v1484_v9 = vmul.f32 -1.442695, %v294_v62 }
 0x104   :  { %1711 = vrcp.f32 %v631_v1  ;;  %v298_v10 = vadd.f32 %v297_v6, %v2415_v5  ;;  %v299_v11 = vpop.f32.mrb[21].mxu0  ;;  %1002 = vmatmul.mubr.f32.gmra.mrb[68].mxu0 %v828_v3  ;;  %v1694_v12 = vpop.eup %1693  ;;  %v633_v13 = vadd.f32 1.0, %v1692_v7 }
 0x105   :  { %1713 = vrcp.f32 %v632_v4  ;;  %v300_v14 = vadd.f32 %v299_v11, %v2419_v30  ;;  %v830_v8 = vmul.f32 %v1694_v12, %v2444_v25 }
 0x106   :  { %v1696_v15 = vpop.eup %1695  ;;  %1715 = vpow2.f32 %v1483_v2  ;;  %v1485_v16 = vmul.f32 -1.442695, %v298_v10 }
 0x107   :  { %v1698_v17 = vpop.eup %1697  ;;  %1717 = vrcp.f32 %v633_v13  ;;  %v1486_v18 = vmul.f32 -1.442695, %v300_v14  ;;  %v303_v19 = vpop.f32.mrb[22].mxu0  ;;  %v831_v20 = vmul.f32 %v1696_v15, %v2440_v22 }
 0x108   :  { %v1700_v21 = vpop.eup %1699  ;;  %1719 = vpow2.f32 %v1484_v9  ;;  %v304_v23 = vadd.f32 %v303_v19, %v2415_v5  ;;  %v305_v24 = vpop.f32.mrb[23].mxu0  ;;  %v832_v40 = vmul.f32 %v1698_v17, %v2444_v25 }
 0x109   :  { %v1702_v28 = vpop.eup %1701  ;;  %v634_v31 = vadd.f32 1.0, %v1700_v21  ;;  %1721 = vpow2.f32 %v1485_v16  ;;  %1006 = vmatprep.mubr.f32.mxu0 %v831_v20  ;;  %v306_v32 = vadd.f32 %v305_v24, %v2419_v30 }
 0x10a   :  { %v1704_v33 = vpop.eup %1703  ;;  %v635_v34 = vadd.f32 1.0, %v1702_v28  ;;  %1723 = vpow2.f32 %v1486_v18  ;;  %v1487_v35 = vmul.f32 -1.442695, %v304_v23  ;;  %1007 = vmatmul.mubr.f32.gmra.mrb[70].mxu0 %v830_v8 }
 0x10b   :  { %v1706_v36 = vpop.eup %1705  ;;  %1725 = vrcp.f32 %v634_v31  ;;  %v1488_v29 = vmul.f32 -1.442695, %v306_v32  ;;  %v309_v37 = vpop.f32.mrb[24].mxu0  ;;  %v833_v38 = vmul.f32 %v1704_v33, %v2440_v22 }
 0x10c   :  { %v1708_v39 = vpop.eup %1707  ;;  %1727 = vrcp.f32 %v635_v34  ;;  %v310_v26 = vadd.f32 %v309_v37, %v2415_v5  ;;  %v311_v27 = vpop.f32.mrb[25].mxu0  ;;  %v834_v54 = vmul.f32 %v1706_v36, %v2444_v25 }
 0x10d   :  { %v1710_v41 = vpop.eup %1709  ;;  %v636_v42 = vadd.f32 1.0, %v1708_v39  ;;  %1729 = vpow2.f32 %v1487_v35  ;;  %1011 = vmatprep.mubr.f32.mxu0 %v833_v38  ;;  %v312_v43 = vadd.f32 %v311_v27, %v2419_v30 }
 0x10e   :  { %v1712_v44 = vpop.eup %1711  ;;  %v637_v45 = vadd.f32 1.0, %v1710_v41  ;;  %1731 = vpow2.f32 %v1488_v29  ;;  %v1489_v46 = vmul.f32 -1.442695, %v310_v26  ;;  %1012 = vmatmul.mubr.f32.gmra.mrb[72].mxu0 %v832_v40 }
 0x10f   :  { %v1714_v47 = vpop.eup %1713  ;;  %1733 = vrcp.f32 %v636_v42  ;;  %v1490_v48 = vmul.f32 -1.442695, %v312_v43  ;;  %v315_v49 = vpop.f32.mrb[26].mxu0  ;;  %v835_v50 = vmul.f32 %v1712_v44, %v2440_v22 }
 0x110   :  { %v1716_v51 = vpop.eup %1715  ;;  %1735 = vrcp.f32 %v637_v45  ;;  %v316_v52 = vadd.f32 %v315_v49, %v2415_v5  ;;  %v317_v53 = vpop.f32.mrb[27].mxu0  ;;  %v836_v0 = vmul.f32 %v1714_v47, %v2444_v25 }
 0x111   :  { %v1718_v55 = vpop.eup %1717  ;;  %v638_v56 = vadd.f32 1.0, %v1716_v51  ;;  %1737 = vpow2.f32 %v1489_v46  ;;  %1016 = vmatprep.mubr.f32.mxu0 %v835_v50  ;;  %v318_v57 = vadd.f32 %v317_v53, %v2419_v30 }
 0x112   :  { %v1720_v58 = vpop.eup %1719  ;;  %1739 = vpow2.f32 %v1490_v48  ;;  %v1491_v59 = vmul.f32 -1.442695, %v316_v52  ;;  %1017 = vmatmul.mubr.f32.gmra.mrb[74].mxu0 %v834_v54  ;;  %v837_v60 = vmul.f32 %v1718_v55, %v2440_v22 }
 0x113   :  { %v1722_v61 = vpop.eup %1721  ;;  %1741 = vrcp.f32 %v638_v56  ;;  %v639_v62 = vadd.f32 1.0, %v1720_v58  ;;  %v321_v63 = vpop.f32.mrb[28].mxu0  ;;  %v1492_v3 = vmul.f32 -1.442695, %v318_v57 }
 0x114   :  { %v1724_v1 = vpop.eup %1723  ;;  %v640_v2 = vadd.f32 1.0, %v1722_v61  ;;  %1743 = vpow2.f32 %v1491_v59  ;;  %v322_v4 = vadd.f32 %v321_v63, %v2415_v5  ;;  %1021 = vmatprep.mubr.f32.mxu0 %v837_v60  ;;  %v323_v6 = vpop.f32.mrb[29].mxu0 }
 0x115   :  { %v1726_v7 = vpop.eup %1725  ;;  %1745 = vrcp.f32 %v639_v62  ;;  %v641_v9 = vadd.f32 1.0, %v1724_v1  ;;  %v324_v10 = vadd.f32 %v323_v6, %v2419_v30 }
 0x116   :  { %v1728_v11 = vpop.eup %1727  ;;  %1747 = vrcp.f32 %v640_v2  ;;  %v1493_v12 = vmul.f32 -1.442695, %v322_v4  ;;  %1022 = vmatmul.mubr.f32.gmra.mrb[76].mxu0 %v836_v0  ;;  %v838_v16 = vmul.f32 %v1726_v7, %v2444_v25 }
 0x117   :  { %v1730_v13 = vpop.eup %1729  ;;  %1749 = vrcp.f32 %v641_v9  ;;  %v327_v14 = vpop.f32.mrb[30].mxu0  ;;  %v839_v15 = vmul.f32 %v1728_v11, %v2440_v22  ;;  %v1494_v19 = vmul.f32 -1.442695, %v324_v10 }
 0x118   :  { %v1732_v17 = vpop.eup %1731  ;;  %v642_v18 = vadd.f32 1.0, %v1730_v13  ;;  %1751 = vpow2.f32 %v1492_v3  ;;  %v328_v20 = vadd.f32 %v327_v14, %v2415_v5  ;;  %v329_v21 = vpop.f32.mrb[31].mxu0 }
 0x119   :  { %v1734_v23 = vpop.eup %1733  ;;  %v643_v24 = vadd.f32 1.0, %v1732_v17  ;;  %1753 = vpow2.f32 %v1493_v12  ;;  %1026 = vmatprep.mubr.f32.mxu1 %v839_v15  ;;  %v330_v8 = vadd.f32 %v329_v21, %v2419_v30 }
 0x11a   :  { %v1736_v28 = vpop.eup %1735  ;;  %1755 = vrcp.f32 %v642_v18  ;;  %v1495_v31 = vmul.f32 -1.442695, %v328_v20  ;;  %1027 = vmatmul.mubr.f32.vlgmr.msra.gmra.mrb[0].mxu1 %v838_v16  ;;  %v840_v35 = vmul.f32 %v1734_v23, %v2444_v25 }
 0x11b   :  { %v1738_v32 = vpop.eup %1737  ;;  %1757 = vrcp.f32 %v643_v24  ;;  %v333_v33 = vpop.f32.mrb[32].mxu0  ;;  %v841_v34 = vmul.f32 %v1736_v28, %v2440_v22  ;;  %v1496_v37 = vmul.f32 -1.442695, %v330_v8 }
 0x11c   :  { %v1740_v36 = vpop.eup %1739  ;;  %v644_v29 = vadd.f32 1.0, %v1738_v32  ;;  %1759 = vpow2.f32 %v1494_v19  ;;  %v334_v38 = vadd.f32 %v333_v33, %v2415_v5  ;;  %v335_v39 = vpop.f32.mrb[33].mxu0 }
 0x11d   :  { %v1742_v26 = vpop.eup %1741  ;;  %v645_v27 = vadd.f32 1.0, %v1740_v36  ;;  %1761 = vpow2.f32 %v1495_v31  ;;  %1031 = vmatprep.mubr.f32.mxu1 %v841_v34  ;;  %v336_v40 = vadd.f32 %v335_v39, %v2419_v30 }
 0x11e   :  { %v1744_v41 = vpop.eup %1743  ;;  %1763 = vrcp.f32 %v644_v29  ;;  %v1497_v42 = vmul.f32 -1.442695, %v334_v38  ;;  %1032 = vmatmul.mubr.f32.gmra.mrb[2].mxu1 %v840_v35  ;;  %v842_v53 = vmul.f32 %v1742_v26, %v2444_v25 }
 0x11f   :  { %v1746_v43 = vpop.eup %1745  ;;  %1765 = vrcp.f32 %v645_v27  ;;  %v646_v44 = vadd.f32 1.0, %v1744_v41  ;;  %v1498_v45 = vmul.f32 -1.442695, %v336_v40  ;;  %v339_v46 = vpop.f32.mrb[34].mxu0 }
 0x120   :  { %v1748_v47 = vpop.eup %1747  ;;  %1767 = vpow2.f32 %v1496_v37  ;;  %v340_v48 = vadd.f32 %v339_v46, %v2415_v5  ;;  %v843_v49 = vmul.f32 %v1746_v43, %v2440_v22  ;;  %v341_v50 = vpop.f32.mrb[35].mxu0 }
 0x121   :  { %v1750_v51 = vpop.eup %1749  ;;  %1769 = vrcp.f32 %v646_v44  ;;  %v342_v52 = vadd.f32 %v341_v50, %v2419_v30  ;;  %v844_v3 = vmul.f32 %v1748_v47, %v2444_v25 }
 0x122   :  { %v1752_v54 = vpop.eup %1751  ;;  %1771 = vpow2.f32 %v1497_v42  ;;  %v1499_v55 = vmul.f32 -1.442695, %v340_v48  ;;  %1036 = vmatprep.mubr.f32.mxu1 %v843_v49  ;;  %v845_v56 = vmul.f32 %v1750_v51, %v2440_v22 }
 0x123   :  { %v1754_v57 = vpop.eup %1753  ;;  %v647_v58 = vadd.f32 1.0, %v1752_v54  ;;  %1773 = vpow2.f32 %v1498_v45  ;;  %v1500_v59 = vmul.f32 -1.442695, %v342_v52  ;;  %1037 = vmatmul.mubr.f32.gmra.mrb[4].mxu1 %v842_v53  ;;  %v345_v60 = vpop.f32.mrb[36].mxu0 }
 0x124   :  { %v1756_v61 = vpop.eup %1755  ;;  %v648_v62 = vadd.f32 1.0, %v1754_v57  ;;  %1775 = vpow2.f32 %v1499_v55  ;;  %v346_v63 = vadd.f32 %v345_v60, %v2415_v5  ;;  %1041 = vmatprep.mubr.f32.mxu1 %v845_v56  ;;  %v347_v0 = vpop.f32.mrb[37].mxu0 }
 0x125   :  { %v1758_v1 = vpop.eup %1757  ;;  %1777 = vrcp.f32 %v647_v58  ;;  %v348_v2 = vadd.f32 %v347_v0, %v2419_v30  ;;  %v846_v19 = vmul.f32 %v1756_v61, %v2444_v25 }
 0x126   :  { %v1760_v4 = vpop.eup %1759  ;;  %1779 = vrcp.f32 %v648_v62  ;;  %v1501_v6 = vmul.f32 -1.442695, %v346_v63  ;;  %v847_v7 = vmul.f32 %v1758_v1, %v2440_v22 }
 0x127   :  { %v1762_v9 = vpop.eup %1761  ;;  %v649_v10 = vadd.f32 1.0, %v1760_v4  ;;  %1781 = vpow2.f32 %v1500_v59  ;;  %v1502_v11 = vmul.f32 -1.442695, %v348_v2  ;;  %1042 = vmatmul.mubr.f32.gmra.mrb[6].mxu1 %v844_v3  ;;  %v351_v12 = vpop.f32.mrb[38].mxu0 }
 0x128   :  { %v1764_v13 = vpop.eup %1763  ;;  %v650_v14 = vadd.f32 1.0, %v1762_v9  ;;  %1783 = vpow2.f32 %v1501_v6  ;;  %v352_v15 = vadd.f32 %v351_v12, %v2415_v5  ;;  %1046 = vmatprep.mubr.f32.mxu1 %v847_v7  ;;  %v353_v16 = vpop.f32.mrb[39].mxu0 }
 0x129   :  { %v1766_v17 = vpop.eup %1765  ;;  %1785 = vrcp.f32 %v649_v10  ;;  %v354_v18 = vadd.f32 %v353_v16, %v2419_v30  ;;  %v848_v37 = vmul.f32 %v1764_v13, %v2444_v25 }
 0x12a   :  { %v1768_v20 = vpop.eup %1767  ;;  %1787 = vrcp.f32 %v650_v14  ;;  %v1503_v21 = vmul.f32 -1.442695, %v352_v15  ;;  %v849_v23 = vmul.f32 %v1766_v17, %v2440_v22 }
 0x12b   :  { %v1770_v24 = vpop.eup %1769  ;;  %v651_v8 = vadd.f32 1.0, %v1768_v20  ;;  %1789 = vpow2.f32 %v1502_v11  ;;  %v1504_v28 = vmul.f32 -1.442695, %v354_v18  ;;  %1047 = vmatmul.mubr.f32.gmra.mrb[8].mxu1 %v846_v19  ;;  %v357_v31 = vpop.f32.mrb[40].mxu0 }
 0x12c   :  { %v1772_v32 = vpop.eup %1771  ;;  %1791 = vpow2.f32 %v1503_v21  ;;  %v358_v33 = vadd.f32 %v357_v31, %v2415_v5  ;;  %1051 = vmatprep.mubr.f32.mxu1 %v849_v23  ;;  %v359_v34 = vpop.f32.mrb[41].mxu0  ;;  %v850_v49 = vmul.f32 %v1770_v24, %v2444_v25 }
 0x12d   :  { %v1774_v35 = vpop.eup %1773  ;;  %1793 = vrcp.f32 %v651_v8  ;;  %v652_v36 = vadd.f32 1.0, %v1772_v32  ;;  %v360_v29 = vadd.f32 %v359_v34, %v2419_v30 }
 0x12e   :  { %v1776_v38 = vpop.eup %1775  ;;  %v653_v39 = vadd.f32 1.0, %v1774_v35  ;;  %1795 = vpow2.f32 %v1504_v28  ;;  %v1505_v26 = vmul.f32 -1.442695, %v358_v33 }
 0x12f   :  { %v1778_v27 = vpop.eup %1777  ;;  %1797 = vrcp.f32 %v652_v36  ;;  %v654_v40 = vadd.f32 1.0, %v1776_v38  ;;  %v1506_v41 = vmul.f32 -1.442695, %v360_v29  ;;  %1052 = vmatmul.mubr.f32.gmra.mrb[10].mxu1 %v848_v37  ;;  %v363_v42 = vpop.f32.mrb[42].mxu0 }
 0x130   :  { %v1780_v43 = vpop.eup %1779  ;;  %1799 = vrcp.f32 %v653_v39  ;;  %v364_v44 = vadd.f32 %v363_v42, %v2415_v5  ;;  %v851_v45 = vmul.f32 %v1778_v27, %v2440_v22  ;;  %v365_v46 = vpop.f32.mrb[43].mxu0 }
 0x131   :  { %v1782_v47 = vpop.eup %1781  ;;  %1801 = vrcp.f32 %v654_v40  ;;  %v366_v48 = vadd.f32 %v365_v46, %v2419_v30  ;;  %v852_v63 = vmul.f32 %v1780_v43, %v2444_v25 }
 0x132   :  { %v1784_v50 = vpop.eup %1783  ;;  %v655_v51 = vadd.f32 1.0, %v1782_v47  ;;  %1803 = vpow2.f32 %v1505_v26  ;;  %v1507_v52 = vmul.f32 -1.442695, %v364_v44  ;;  %1056 = vmatprep.mubr.f32.mxu1 %v851_v45 }
 0x133   :  { %v1786_v53 = vpop.eup %1785  ;;  %v656_v54 = vadd.f32 1.0, %v1784_v50  ;;  %1805 = vpow2.f32 %v1506_v41  ;;  %v1508_v55 = vmul.f32 -1.442695, %v366_v48  ;;  %1057 = vmatmul.mubr.f32.gmra.mrb[12].mxu1 %v850_v49  ;;  %v369_v56 = vpop.f32.mrb[44].mxu0 }
 0x134   :  { %v1788_v57 = vpop.eup %1787  ;;  %1807 = vrcp.f32 %v655_v51  ;;  %v370_v58 = vadd.f32 %v369_v56, %v2415_v5  ;;  %v853_v59 = vmul.f32 %v1786_v53, %v2440_v22  ;;  %v371_v60 = vpop.f32.mrb[45].mxu0 }
 0x135   :  { %v1790_v61 = vpop.eup %1789  ;;  %1809 = vrcp.f32 %v656_v54  ;;  %v372_v62 = vadd.f32 %v371_v60, %v2419_v30  ;;  %v854_v16 = vmul.f32 %v1788_v57, %v2444_v25 }
 0x136   :  { %v1792_v0 = vpop.eup %1791  ;;  %v657_v1 = vadd.f32 1.0, %v1790_v61  ;;  %1811 = vpow2.f32 %v1507_v52  ;;  %v1509_v2 = vmul.f32 -1.442695, %v370_v58  ;;  %1061 = vmatprep.mubr.f32.mxu1 %v853_v59 }
 0x137   :  { %v1794_v3 = vpop.eup %1793  ;;  %v658_v4 = vadd.f32 1.0, %v1792_v0  ;;  %1813 = vpow2.f32 %v1508_v55  ;;  %1062 = vmatmul.mubr.f32.gmra.mrb[14].mxu1 %v852_v63  ;;  %v375_v6 = vpop.f32.mrb[46].mxu0  ;;  %v1510_v9 = vmul.f32 -1.442695, %v372_v62 }
 0x138   :  { %v1796_v7 = vpop.eup %1795  ;;  %1815 = vrcp.f32 %v657_v1  ;;  %v376_v10 = vadd.f32 %v375_v6, %v2415_v5  ;;  %v855_v11 = vmul.f32 %v1794_v3, %v2440_v22  ;;  %v377_v12 = vpop.f32.mrb[47].mxu0 }
 0x139   :  { %v1798_v13 = vpop.eup %1797  ;;  %1817 = vrcp.f32 %v658_v4  ;;  %v659_v14 = vadd.f32 1.0, %v1796_v7  ;;  %v378_v15 = vadd.f32 %v377_v12, %v2419_v30 }
 0x13a   :  { %v1800_v17 = vpop.eup %1799  ;;  %1819 = vpow2.f32 %v1509_v2  ;;  %v1511_v18 = vmul.f32 -1.442695, %v376_v10  ;;  %1066 = vmatprep.mubr.f32.mxu1 %v855_v11  ;;  %v856_v34 = vmul.f32 %v1798_v13, %v2444_v25 }
 0x13b   :  { %v1802_v19 = vpop.eup %1801  ;;  %1821 = vrcp.f32 %v659_v14  ;;  %v1512_v20 = vmul.f32 -1.442695, %v378_v15  ;;  %1067 = vmatmul.mubr.f32.gmra.mrb[16].mxu1 %v854_v16  ;;  %v381_v21 = vpop.f32.mrb[48].mxu0  ;;  %v857_v23 = vmul.f32 %v1800_v17, %v2440_v22 }
 0x13c   :  { %v1804_v24 = vpop.eup %1803  ;;  %1823 = vpow2.f32 %v1510_v9  ;;  %v382_v8 = vadd.f32 %v381_v21, %v2415_v5  ;;  %v383_v28 = vpop.f32.mrb[49].mxu0  ;;  %v858_v45 = vmul.f32 %v1802_v19, %v2444_v25 }
 0x13d   :  { %v1806_v31 = vpop.eup %1805  ;;  %v660_v32 = vadd.f32 1.0, %v1804_v24  ;;  %1825 = vpow2.f32 %v1511_v18  ;;  %1071 = vmatprep.mubr.f32.mxu1 %v857_v23  ;;  %v384_v33 = vadd.f32 %v383_v28, %v2419_v30 }
 0x13e   :  { %v1808_v35 = vpop.eup %1807  ;;  %v661_v36 = vadd.f32 1.0, %v1806_v31  ;;  %1827 = vpow2.f32 %v1512_v20  ;;  %v1513_v29 = vmul.f32 -1.442695, %v382_v8 }
 0x13f   :  { %v1810_v37 = vpop.eup %1809  ;;  %1829 = vrcp.f32 %v660_v32  ;;  %v1514_v38 = vmul.f32 -1.442695, %v384_v33  ;;  %1072 = vmatmul.mubr.f32.gmra.mrb[18].mxu1 %v856_v34  ;;  %v387_v39 = vpop.f32.mrb[50].mxu0  ;;  %v859_v26 = vmul.f32 %v1808_v35, %v2440_v22 }
 0x140   :  { %v1812_v27 = vpop.eup %1811  ;;  %1831 = vrcp.f32 %v661_v36  ;;  %v388_v40 = vadd.f32 %v387_v39, %v2415_v5  ;;  %v389_v41 = vpop.f32.mrb[51].mxu0  ;;  %v860_v59 = vmul.f32 %v1810_v37, %v2444_v25 }
 0x141   :  { %v1814_v42 = vpop.eup %1813  ;;  %v662_v43 = vadd.f32 1.0, %v1812_v27  ;;  %1833 = vpow2.f32 %v1513_v29  ;;  %1076 = vmatprep.mubr.f32.mxu1 %v859_v26  ;;  %v390_v44 = vadd.f32 %v389_v41, %v2419_v30 }
 0x142   :  { %v1816_v46 = vpop.eup %1815  ;;  %v663_v47 = vadd.f32 1.0, %v1814_v42  ;;  %1835 = vpow2.f32 %v1514_v38  ;;  %v1515_v48 = vmul.f32 -1.442695, %v388_v40 }
 0x143   :  { %v1818_v49 = vpop.eup %1817  ;;  %1837 = vrcp.f32 %v662_v43  ;;  %v1516_v50 = vmul.f32 -1.442695, %v390_v44  ;;  %1077 = vmatmul.mubr.f32.gmra.mrb[20].mxu1 %v858_v45  ;;  %v393_v51 = vpop.f32.mrb[52].mxu0  ;;  %v861_v52 = vmul.f32 %v1816_v46, %v2440_v22 }
 0x144   :  { %v1820_v53 = vpop.eup %1819  ;;  %1839 = vrcp.f32 %v663_v47  ;;  %v394_v54 = vadd.f32 %v393_v51, %v2415_v5  ;;  %v395_v55 = vpop.f32.mrb[53].mxu0  ;;  %v862_v12 = vmul.f32 %v1818_v49, %v2444_v25 }
 0x145   :  { %v1822_v56 = vpop.eup %1821  ;;  %v664_v57 = vadd.f32 1.0, %v1820_v53  ;;  %1841 = vpow2.f32 %v1515_v48  ;;  %1081 = vmatprep.mubr.f32.mxu1 %v861_v52  ;;  %v396_v58 = vadd.f32 %v395_v55, %v2419_v30 }
 0x146   :  { %v1824_v60 = vpop.eup %1823  ;;  %1843 = vpow2.f32 %v1516_v50  ;;  %v1517_v61 = vmul.f32 -1.442695, %v394_v54  ;;  %v863_v62 = vmul.f32 %v1822_v56, %v2440_v22 }
 0x147   :  { %v1826_v63 = vpop.eup %1825  ;;  %1845 = vrcp.f32 %v664_v57  ;;  %v665_v0 = vadd.f32 1.0, %v1824_v60  ;;  %1082 = vmatmul.mubr.f32.gmra.mrb[22].mxu1 %v860_v59  ;;  %v399_v1 = vpop.f32.mrb[54].mxu0  ;;  %v1518_v4 = vmul.f32 -1.442695, %v396_v58 }
 0x148   :  { %v1828_v2 = vpop.eup %1827  ;;  %v666_v3 = vadd.f32 1.0, %v1826_v63  ;;  %1847 = vpow2.f32 %v1517_v61  ;;  %v400_v6 = vadd.f32 %v399_v1, %v2415_v5  ;;  %1086 = vmatprep.mubr.f32.mxu1 %v863_v62  ;;  %v401_v7 = vpop.f32.mrb[55].mxu0 }
 0x149   :  { %v1830_v9 = vpop.eup %1829  ;;  %1849 = vrcp.f32 %v665_v0  ;;  %v667_v10 = vadd.f32 1.0, %v1828_v2  ;;  %v402_v11 = vadd.f32 %v401_v7, %v2419_v30 }
 0x14a   :  { %v1832_v13 = vpop.eup %1831  ;;  %1851 = vrcp.f32 %v666_v3  ;;  %v1519_v14 = vmul.f32 -1.442695, %v400_v6  ;;  %v864_v31 = vmul.f32 %v1830_v9, %v2444_v25 }
 0x14b   :  { %v1834_v15 = vpop.eup %1833  ;;  %1853 = vrcp.f32 %v667_v10  ;;  %1087 = vmatmul.mubr.f32.gmra.mrb[24].mxu1 %v862_v12  ;;  %v405_v16 = vpop.f32.mrb[56].mxu0  ;;  %v865_v17 = vmul.f32 %v1832_v13, %v2440_v22  ;;  %v1520_v20 = vmul.f32 -1.442695, %v402_v11 }
 0x14c   :  { %v1836_v18 = vpop.eup %1835  ;;  %v668_v19 = vadd.f32 1.0, %v1834_v15  ;;  %1855 = vpow2.f32 %v1518_v4  ;;  %v406_v21 = vadd.f32 %v405_v16, %v2415_v5  ;;  %v407_v23 = vpop.f32.mrb[57].mxu0 }
 0x14d   :  { %v1838_v24 = vpop.eup %1837  ;;  %v669_v8 = vadd.f32 1.0, %v1836_v18  ;;  %1857 = vpow2.f32 %v1519_v14  ;;  %1091 = vmatprep.mubr.f32.mxu1 %v865_v17  ;;  %v408_v28 = vadd.f32 %v407_v23, %v2419_v30 }
 0x14e   :  { %v1840_v32 = vpop.eup %1839  ;;  %1859 = vrcp.f32 %v668_v19  ;;  %v1521_v33 = vmul.f32 -1.442695, %v406_v21  ;;  %v866_v42 = vmul.f32 %v1838_v24, %v2444_v25 }
 0x14f   :  { %v1842_v34 = vpop.eup %1841  ;;  %1861 = vrcp.f32 %v669_v8  ;;  %1092 = vmatmul.mubr.f32.gmra.mrb[26].mxu1 %v864_v31  ;;  %v411_v35 = vpop.f32.mrb[58].mxu0  ;;  %v867_v36 = vmul.f32 %v1840_v32, %v2440_v22  ;;  %v1522_v38 = vmul.f32 -1.442695, %v408_v28 }
 0x150   :  { %v1844_v29 = vpop.eup %1843  ;;  %v670_v37 = vadd.f32 1.0, %v1842_v34  ;;  %1863 = vpow2.f32 %v1520_v20  ;;  %v412_v39 = vadd.f32 %v411_v35, %v2415_v5  ;;  %v413_v26 = vpop.f32.mrb[59].mxu0 }
 0x151   :  { %v1846_v27 = vpop.eup %1845  ;;  %v671_v40 = vadd.f32 1.0, %v1844_v29  ;;  %1865 = vpow2.f32 %v1521_v33  ;;  %1096 = vmatprep.mubr.f32.mxu1 %v867_v36  ;;  %v414_v41 = vadd.f32 %v413_v26, %v2419_v30 }
 0x152   :  { %v1848_v43 = vpop.eup %1847  ;;  %1867 = vrcp.f32 %v670_v37  ;;  %v1523_v44 = vmul.f32 -1.442695, %v412_v39  ;;  %v868_v55 = vmul.f32 %v1846_v27, %v2444_v25 }
 0x153   :  { %v1850_v45 = vpop.eup %1849  ;;  %1869 = vrcp.f32 %v671_v40  ;;  %v672_v46 = vadd.f32 1.0, %v1848_v43  ;;  %v1524_v47 = vmul.f32 -1.442695, %v414_v41  ;;  %1097 = vmatmul.mubr.f32.gmra.mrb[28].mxu1 %v866_v42  ;;  %v417_v48 = vpop.f32.mrb[60].mxu0 }
 0x154   :  { %v1852_v49 = vpop.eup %1851  ;;  %1871 = vpow2.f32 %v1522_v38  ;;  %v418_v50 = vadd.f32 %v417_v48, %v2415_v5  ;;  %v869_v51 = vmul.f32 %v1850_v45, %v2440_v22  ;;  %v419_v52 = vpop.f32.mrb[61].mxu0 }
 0x155   :  { %v1854_v53 = vpop.eup %1853  ;;  %1873 = vrcp.f32 %v672_v46  ;;  %v420_v54 = vadd.f32 %v419_v52, %v2419_v30  ;;  %v870_v6 = vmul.f32 %v1852_v49, %v2444_v25 }
 0x156   :  { %v1856_v56 = vpop.eup %1855  ;;  %1875 = vpow2.f32 %v1523_v44  ;;  %v1525_v57 = vmul.f32 -1.442695, %v418_v50  ;;  %1101 = vmatprep.mubr.f32.mxu1 %v869_v51  ;;  %v871_v58 = vmul.f32 %v1854_v53, %v2440_v22 }
 0x157   :  { %v1858_v59 = vpop.eup %1857  ;;  %v673_v60 = vadd.f32 1.0, %v1856_v56  ;;  %1877 = vpow2.f32 %v1524_v47  ;;  %v1526_v61 = vmul.f32 -1.442695, %v420_v54  ;;  %1102 = vmatmul.mubr.f32.gmra.mrb[30].mxu1 %v868_v55  ;;  %v423_v62 = vpop.f32.mrb[62].mxu0 }
 0x158   :  { %v1860_v63 = vpop.eup %1859  ;;  %v674_v0 = vadd.f32 1.0, %v1858_v59  ;;  %1879 = vpow2.f32 %v1525_v57  ;;  %v424_v1 = vadd.f32 %v423_v62, %v2415_v5  ;;  %1106 = vmatprep.mubr.f32.mxu1 %v871_v58  ;;  %v425_v2 = vpop.f32.mrb[63].mxu0  ;;  %v2563_v58 = vld [vmem:[%s2749_s6] ss:$0 sm:$0xff] }
 0x159   :  { %v1862_v3 = vpop.eup %1861  ;;  %1881 = vrcp.f32 %v673_v60  ;;  %v426_v4 = vadd.f32 %v425_v2, %v2419_v30  ;;  %v872_v30 = vmul.f32 %v1860_v63, %v2444_v25 }
 0x15a   :  { %v1864_v7 = vpop.eup %1863  ;;  %1883 = vrcp.f32 %v674_v0  ;;  %v1527_v9 = vmul.f32 -1.442695, %v424_v1  ;;  %v873_v10 = vmul.f32 %v1862_v3, %v2440_v22 }
 0x15b   :  { %v1866_v11 = vpop.eup %1865  ;;  %v675_v12 = vadd.f32 1.0, %v1864_v7  ;;  %1885 = vpow2.f32 %v1526_v61  ;;  %v1528_v13 = vmul.f32 -1.442695, %v426_v4  ;;  %1107 = vmatmul.mubr.f32.gmra.mrb[32].mxu1 %v870_v6 }
 0x15c   :  { %v1868_v14 = vpop.eup %1867  ;;  %v676_v5 = vadd.f32 1.0, %v1866_v11  ;;  %1887 = vpow2.f32 %v1527_v9  ;;  %1111 = vmatprep.mubr.f32.mxu1 %v873_v10 }
 0x15d   :  { %v1870_v15 = vpop.eup %1869  ;;  %1889 = vrcp.f32 %v675_v12  ;;  %v874_v24 = vmul.f32 %v1868_v14, %v2444_v25 }
 0x15e   :  { %v1872_v16 = vpop.eup %1871  ;;  %v875_v17 = vmul.f32 %v1870_v15, %v2440_v22  ;;  %1891 = vpow2.f32 %v1528_v13 }
 0x15f   :  { %v1874_v18 = vpop.eup %1873  ;;  %v677_v19 = vadd.f32 1.0, %v1872_v16  ;;  %1112 = vmatmul.mubr.f32.gmra.mrb[34].mxu1 %v872_v30  ;;  %1893 = vrcp.f32 %v676_v5 }
 0x160   :  { %v1876_v20 = vpop.eup %1875  ;;  %1116 = vmatprep.mubr.f32.mxu1 %v875_v17  ;;  %v876_v36 = vmul.f32 %v1874_v18, %v2444_v25 }
 0x161   :  { %v1878_v21 = vpop.eup %1877  ;;  %1895 = vrcp.f32 %v677_v19  ;;  %v678_v23 = vadd.f32 1.0, %v1876_v20 }
 0x162   :  { %v1880_v8 = vpop.eup %1879  ;;  %v679_v28 = vadd.f32 1.0, %v1878_v21 }
 0x163   :  { %v1882_v31 = vpop.eup %1881  ;;  %1897 = vrcp.f32 %v678_v23  ;;  %v680_v32 = vadd.f32 1.0, %v1880_v8  ;;  %1117 = vmatmul.mubr.f32.gmra.mrb[36].mxu1 %v874_v24 }
 0x164   :  { %v1884_v33 = vpop.eup %1883  ;;  %1899 = vrcp.f32 %v679_v28  ;;  %v877_v34 = vmul.f32 %v1882_v31, %v2440_v22 }
 0x165   :  { %v1886_v35 = vpop.eup %1885  ;;  %1901 = vrcp.f32 %v680_v32  ;;  %v878_v40 = vmul.f32 %v1884_v33, %v2444_v25 }
 0x166   :  { %v1888_v29 = vpop.eup %1887  ;;  %v681_v37 = vadd.f32 1.0, %v1886_v35  ;;  %1121 = vmatprep.mubr.f32.mxu1 %v877_v34 }
 0x167   :  { %v1890_v38 = vpop.eup %1889  ;;  %v682_v39 = vadd.f32 1.0, %v1888_v29  ;;  %1122 = vmatmul.mubr.f32.gmra.mrb[38].mxu1 %v876_v36 }
 0x168   :  { %1903 = vrcp.f32 %v681_v37  ;;  %v879_v26 = vmul.f32 %v1890_v38, %v2440_v22  ;;  %v1892_v27 = vpop.eup %1891 }
 0x169   :  { %v1894_v41 = vpop.eup %1893  ;;  %v683_v42 = vadd.f32 1.0, %v1892_v27  ;;  %1905 = vrcp.f32 %v682_v39 }
 0x16a   :  { %1126 = vmatprep.mubr.f32.mxu1 %v879_v26  ;;  %v880_v46 = vmul.f32 %v1894_v41, %v2444_v25 }
 0x16b   :  { %v1896_v43 = vpop.eup %1895  ;;  %1127 = vmatmul.mubr.f32.gmra.mrb[40].mxu1 %v878_v40  ;;  %1907 = vrcp.f32 %v683_v42 }
 0x16c   :  { %v881_v44 = vmul.f32 %v1896_v43, %v2440_v22 }
 0x16d   :  { %v1898_v45 = vpop.eup %1897 }
 0x16e   :  { %v1900_v47 = vpop.eup %1899  ;;  %1131 = vmatprep.mubr.f32.mxu1 %v881_v44  ;;  %v882_v50 = vmul.f32 %v1898_v45, %v2444_v25 }
 0x16f   :  { %1132 = vmatmul.mubr.f32.gmra.mrb[42].mxu1 %v880_v46  ;;  %v883_v48 = vmul.f32 %v1900_v47, %v2440_v22  ;;  %v1902_v49 = vpop.eup %1901 }
 0x170   :  { %v884_v54 = vmul.f32 %v1902_v49, %v2444_v25 }
 0x171   :  { %1136 = vmatprep.mubr.f32.mxu1 %v883_v48 }
 0x172   :  { %v1904_v51 = vpop.eup %1903 }
 0x173   :  { %1137 = vmatmul.mubr.f32.gmra.mrb[44].mxu1 %v882_v50  ;;  %v885_v52 = vmul.f32 %v1904_v51, %v2440_v22  ;;  %v1906_v53 = vpop.eup %1905 }
 0x174   :  { %v886_v57 = vmul.f32 %v1906_v53, %v2444_v25 }
 0x175   :  { %1141 = vmatprep.mubr.f32.mxu1 %v885_v52  ;;  %v1908_v55 = vpop.eup %1907 }
 0x176   :  { %v887_v56 = vmul.f32 %v1908_v55, %v2440_v22 }
 0x177   :  { %1142 = vmatmul.mubr.f32.gmra.mrb[46].mxu1 %v884_v54 }
 0x178   :  { %1146 = vmatprep.mubr.f32.mxu1 %v887_v56 }
 0x17b   :  { %1147 = vmatmul.mubr.f32.gmra.mrb[48].mxu1 %v886_v57 }
 0x1cf   :  { %v993_v59 = vpop.f32.mrb[64].mxu0 }
 0x1d0   :  { %v2566_v60 = vadd.f32 %v2563_v58, %v993_v59  ;;  %v995_v61 = vpop.f32.mrb[65].mxu0 }
 0x1d3   :  { %v998_v62 = vpop.f32.mrb[66].mxu0 }
 0x1d4   :  { %v2569_v63 = vadd.f32 %v2563_v58, %v998_v62  ;;  %v1000_v0 = vpop.f32.mrb[67].mxu0 }
 0x1d7   :  { %v1003_v22 = vpop.f32.mrb[68].mxu0 }
 0x1d8   :  { %v2572_v1 = vadd.f32 %v2563_v58, %v1003_v22  ;;  %v1005_v25 = vpop.f32.mrb[69].mxu0 }
 0x1dd   :  { %v1008_v2 = vpop.f32.mrb[70].mxu0 }
 0x1de   :  { %v2575_v3 = vadd.f32 %v2563_v58, %v1008_v2  ;;  %v1010_v4 = vpop.f32.mrb[71].mxu0 }
 0x1e1   :  { %v1013_v6 = vpop.f32.mrb[72].mxu0 }
 0x1e2   :  { %v2578_v7 = vadd.f32 %v2563_v58, %v1013_v6  ;;  %v1015_v9 = vpop.f32.mrb[73].mxu0 }
 0x1e5   :  { %v1018_v10 = vpop.f32.mrb[74].mxu0 }
 0x1e6   :  { %v2581_v11 = vadd.f32 %v2563_v58, %v1018_v10  ;;  %v1020_v12 = vpop.f32.mrb[75].mxu0 }
 0x1e9   :  { %v1023_v13 = vpop.f32.mrb[76].mxu0 }
 0x1ea   :  { %v2584_v14 = vadd.f32 %v2563_v58, %v1023_v13  ;;  %v1025_v5 = vpop.f32.mrb[77].mxu0 }
 0x1ed   :  { %v1028_v15 = vpop.f32.mrb[0].mxu1 }
 0x1ee   :  { %v2587_v30 = vadd.f32 %v2563_v58, %v1028_v15  ;;  %v1030_v16 = vpop.f32.mrb[1].mxu1 }
 0x1f1   :  { %v1033_v17 = vpop.f32.mrb[2].mxu1 }
 0x1f2   :  { %v2590_v18 = vadd.f32 %v2563_v58, %v1033_v17  ;;  %v1035_v19 = vpop.f32.mrb[3].mxu1 }
 0x1f6   :  { %v1038_v20 = vpop.f32.mrb[4].mxu1 }
 0x1f7   :  { %v2593_v21 = vadd.f32 %v2563_v58, %v1038_v20  ;;  %v1040_v23 = vpop.f32.mrb[5].mxu1 }
 0x1fa   :  { %v1043_v24 = vpop.f32.mrb[6].mxu1 }
 0x1fb   :  { %v2596_v8 = vadd.f32 %v2563_v58, %v1043_v24  ;;  %v1045_v28 = vpop.f32.mrb[7].mxu1 }
 0x1fe   :  { %v1048_v31 = vpop.f32.mrb[8].mxu1 }
 0x1ff   :  { %v2599_v32 = vadd.f32 %v2563_v58, %v1048_v31  ;;  %v1050_v33 = vpop.f32.mrb[9].mxu1 }
 0x202   :  { %v1053_v34 = vpop.f32.mrb[10].mxu1 }
 0x203   :  { %v2602_v35 = vadd.f32 %v2563_v58, %v1053_v34  ;;  %v1055_v36 = vpop.f32.mrb[11].mxu1 }
 0x206   :  { %v1058_v29 = vpop.f32.mrb[12].mxu1 }
 0x207   :  { %v2605_v37 = vadd.f32 %v2563_v58, %v1058_v29  ;;  %v1060_v38 = vpop.f32.mrb[13].mxu1 }
 0x20a   :  { %v1063_v39 = vpop.f32.mrb[14].mxu1 }
 0x20b   :  { %v2608_v26 = vadd.f32 %v2563_v58, %v1063_v39  ;;  %v1065_v27 = vpop.f32.mrb[15].mxu1 }
 0x20e   :  { %v1068_v40 = vpop.f32.mrb[16].mxu1 }
 0x20f   :  { %v2611_v41 = vadd.f32 %v2563_v58, %v1068_v40  ;;  %v1070_v42 = vpop.f32.mrb[17].mxu1 }
 0x212   :  { %v1073_v43 = vpop.f32.mrb[18].mxu1 }
 0x213   :  { %v2614_v44 = vadd.f32 %v2563_v58, %v1073_v43  ;;  %v1075_v45 = vpop.f32.mrb[19].mxu1 }
 0x214   :  { %v1531_v45 = vmul.f32 (!%p1530_p0), -1.442695, %v2566_v60 }
 0x216   :  { %v1078_v46 = vpop.f32.mrb[20].mxu1  ;;  %1909 = vpow2.f32 (!%p1530_p0), %v1531_v45 }
 0x217   :  { %v2617_v47 = vadd.f32 %v2563_v58, %v1078_v46  ;;  %v1080_v48 = vpop.f32.mrb[21].mxu1  ;;  %v1532_v46 = vmul.f32 (!%p1530_p0), -1.442695, %v2569_v63 }
 0x218   :  { %v1533_v48 = vmul.f32 (!%p1530_p0), -1.442695, %v2572_v1 }
 0x219   :  { %1911 = vpow2.f32 (!%p1530_p0), %v1532_v46 }
 0x21a   :  { %v1083_v49 = vpop.f32.mrb[22].mxu1  ;;  %1913 = vpow2.f32 (!%p1530_p0), %v1533_v48 }
 0x21b   :  { %v2620_v50 = vadd.f32 %v2563_v58, %v1083_v49  ;;  %v1085_v51 = vpop.f32.mrb[23].mxu1  ;;  %v1534_v49 = vmul.f32 (!%p1530_p0), -1.442695, %v2575_v3 }
 0x21c   :  { %v1535_v51 = vmul.f32 (!%p1530_p0), -1.442695, %v2578_v7 }
 0x21d   :  { %1915 = vpow2.f32 (!%p1530_p0), %v1534_v49 }
 0x21e   :  { %v1088_v52 = vpop.f32.mrb[24].mxu1  ;;  %1917 = vpow2.f32 (!%p1530_p0), %v1535_v51 }
 0x21f   :  { %v2623_v53 = vadd.f32 %v2563_v58, %v1088_v52  ;;  %v1090_v54 = vpop.f32.mrb[25].mxu1  ;;  %v1537_v52 = vmul.f32 (!%p1530_p0), -1.442695, %v2584_v14 }
 0x220   :  { %v1538_v54 = vmul.f32 (!%p1530_p0), -1.442695, %v2587_v30 }
 0x222   :  { %v1093_v55 = vpop.f32.mrb[26].mxu1 }
 0x223   :  { %v2626_v56 = vadd.f32 %v2563_v58, %v1093_v55  ;;  %v1095_v57 = vpop.f32.mrb[27].mxu1  ;;  %v1539_v55 = vmul.f32 (!%p1530_p0), -1.442695, %v2590_v18 }
 0x224   :  { %v1540_v57 = vmul.f32 (!%p1530_p0), -1.442695, %v2593_v21 }
 0x226   :  { %v1098_v59 = vpop.f32.mrb[28].mxu1 }
 0x227   :  { %v2629_v61 = vadd.f32 %v2563_v58, %v1098_v59  ;;  %v1100_v62 = vpop.f32.mrb[29].mxu1  ;;  %v1541_v59 = vmul.f32 (!%p1530_p0), -1.442695, %v2596_v8 }
 0x228   :  { %v1542_v62 = vmul.f32 (!%p1530_p0), -1.442695, %v2599_v32 }
 0x22a   :  { %v1103_v0 = vpop.f32.mrb[30].mxu1 }
 0x22b   :  { %v2632_v22 = vadd.f32 %v2563_v58, %v1103_v0  ;;  %v1105_v25 = vpop.f32.mrb[31].mxu1  ;;  %v1543_v0 = vmul.f32 (!%p1530_p0), -1.442695, %v2602_v35 }
 0x22c   :  { %v1910_v25 = vpop.eup (!%p1530_p0), %1909 }
 0x22e   :  { %v1108_v2 = vpop.f32.mrb[32].mxu1 }
 0x22f   :  { %v2635_v4 = vadd.f32 %v2563_v58, %v1108_v2  ;;  %v1110_v6 = vpop.f32.mrb[33].mxu1  ;;  %v1912_v2 = vpop.eup (!%p1530_p0), %1911 }
 0x230   :  { %v1253_v6 = vadd.f32 (!%p1530_p0), 1.0, %v1910_v25  ;;  %v1547_v25 = vmul.f32 (!%p1530_p0), -1.442695, %v2614_v44 }
 0x232   :  { %v1113_v9 = vpop.f32.mrb[34].mxu1 }
 0x233   :  { %v2638_v10 = vadd.f32 %v2563_v58, %v1113_v9  ;;  %v1115_v12 = vpop.f32.mrb[35].mxu1  ;;  %v1914_v9 = vpop.eup (!%p1530_p0), %1913 }
 0x234   :  { %v1254_v12 = vadd.f32 (!%p1530_p0), 1.0, %v1912_v2 }
 0x236   :  { %v1118_v13 = vpop.f32.mrb[36].mxu1 }
 0x237   :  { %v2641_v5 = vadd.f32 %v2563_v58, %v1118_v13  ;;  %v1120_v15 = vpop.f32.mrb[37].mxu1  ;;  %v1916_v13 = vpop.eup (!%p1530_p0), %1915 }
 0x238   :  { %v1255_v15 = vadd.f32 (!%p1530_p0), 1.0, %v1914_v9 }
 0x23a   :  { %v1123_v16 = vpop.f32.mrb[38].mxu1 }
 0x23b   :  { %v2644_v17 = vadd.f32 %v2563_v58, %v1123_v16  ;;  %v1125_v19 = vpop.f32.mrb[39].mxu1  ;;  %v1918_v16 = vpop.eup (!%p1530_p0), %1917 }
 0x23c   :  { %v1256_v19 = vadd.f32 (!%p1530_p0), 1.0, %v1916_v13 }
 0x23e   :  { %v1128_v20 = vpop.f32.mrb[40].mxu1 }
 0x23f   :  { %v2647_v23 = vadd.f32 %v2563_v58, %v1128_v20  ;;  %v1130_v24 = vpop.f32.mrb[41].mxu1 }
 0x240   :  { %v1257_v24 = vadd.f32 (!%p1530_p0), 1.0, %v1918_v16 }
 0x242   :  { %v1133_v28 = vpop.f32.mrb[42].mxu1 }
 0x243   :  { %v2650_v31 = vadd.f32 %v2563_v58, %v1133_v28  ;;  %v1135_v33 = vpop.f32.mrb[43].mxu1 }
 0x246   :  { %v1138_v34 = vpop.f32.mrb[44].mxu1 }
 0x247   :  { %v2653_v36 = vadd.f32 %v2563_v58, %v1138_v34  ;;  %v1140_v29 = vpop.f32.mrb[45].mxu1 }
 0x249   :  { %1156 = sbr.rel (%p1530_p0) target bundleno = 670 (0x29e), region = 29 }
 0x24a   :  { %v1143_v38 = vpop.f32.mrb[46].mxu1 }
 0x24b   :  { %v2656_v39 = vadd.f32 %v2563_v58, %v1143_v38  ;;  %v1145_v27 = vpop.f32.mrb[47].mxu1 }
 0x24e   :  { %v1148_v40 = vpop.f32.mrb[48].mxu1 }
 0x24f   :  { %v2659_v42 = vadd.f32 %v2563_v58, %v1148_v40  ;;  %v1150_v43 = vpop.f32.mrb[49].mxu1  ;;  %v1536_v58 = vmul.f32 (!%p1530_p0), -1.442695, %v2581_v11 }
 0x251   :  { %1919 = vpow2.f32 %v1536_v58 }
 0x252   :  { %1921 = vpow2.f32 %v1537_v52  ;;  %v1544_v52 = vmul.f32 -1.442695, %v2605_v37 }
 0x253   :  { %1923 = vpow2.f32 %v1538_v54 }
 0x254   :  { %1925 = vpow2.f32 %v1539_v55 }
 0x255   :  { %1927 = vpow2.f32 %v1540_v57  ;;  %v1545_v57 = vmul.f32 -1.442695, %v2608_v26 }
 0x256   :  { %1929 = vpow2.f32 %v1541_v59 }
 0x257   :  { %1931 = vpow2.f32 %v1542_v62  ;;  %v1546_v62 = vmul.f32 -1.442695, %v2611_v41 }
 0x258   :  { %1933 = vpow2.f32 %v1543_v0 }
 0x259   :  { %1935 = vrcp.f32 %v1253_v6  ;;  %v1548_v6 = vmul.f32 -1.442695, %v2617_v47 }
 0x25a   :  { %1937 = vrcp.f32 %v1254_v12  ;;  %v1549_v12 = vmul.f32 -1.442695, %v2620_v50 }
 0x25b   :  { %v1920_v20 = vpop.eup %1919  ;;  %1939 = vrcp.f32 %v1255_v15  ;;  %v1550_v15 = vmul.f32 -1.442695, %v2623_v53 }
 0x25c   :  { %v1922_v28 = vpop.eup %1921  ;;  %1941 = vrcp.f32 %v1256_v19  ;;  %v1258_v33 = vadd.f32 1.0, %v1920_v20  ;;  %v1551_v19 = vmul.f32 -1.442695, %v2626_v56 }
 0x25d   :  { %v1924_v34 = vpop.eup %1923  ;;  %1943 = vrcp.f32 %v1257_v24  ;;  %v1259_v29 = vadd.f32 1.0, %v1922_v28  ;;  %v1552_v24 = vmul.f32 -1.442695, %v2629_v61 }
 0x25e   :  { %v1926_v38 = vpop.eup %1925  ;;  %1945 = vrcp.f32 %v1258_v33  ;;  %v1260_v27 = vadd.f32 1.0, %v1924_v34  ;;  %v1553_v33 = vmul.f32 -1.442695, %v2632_v22 }
 0x25f   :  { %v1928_v40 = vpop.eup %1927  ;;  %1947 = vrcp.f32 %v1259_v29  ;;  %v1261_v43 = vadd.f32 1.0, %v1926_v38  ;;  %v1554_v29 = vmul.f32 -1.442695, %v2635_v4 }
 0x260   :  { %v1930_v45 = vpop.eup %1929  ;;  %1949 = vrcp.f32 %v1260_v27  ;;  %v1262_v46 = vadd.f32 1.0, %v1928_v40  ;;  %v1555_v27 = vmul.f32 -1.442695, %v2638_v10 }
 0x261   :  { %v1932_v48 = vpop.eup %1931  ;;  %1951 = vrcp.f32 %v1261_v43  ;;  %v1263_v49 = vadd.f32 1.0, %v1930_v45  ;;  %v1556_v43 = vmul.f32 -1.442695, %v2641_v5 }
 0x262   :  { %v1934_v51 = vpop.eup %1933  ;;  %1953 = vrcp.f32 %v1262_v46  ;;  %v1264_v58 = vadd.f32 1.0, %v1932_v48 }
 0x263   :  { %v1936_v54 = vpop.eup %1935  ;;  %1955 = vrcp.f32 %v1263_v49  ;;  %v1265_v55 = vadd.f32 1.0, %v1934_v51 }
 0x264   :  { %v1938_v59 = vpop.eup %1937  ;;  %1349 = vst [vmem:[#allocation4] sm:$0xff] %v1936_v54  ;;  %1957 = vrcp.f32 %v1264_v58 }
 0x265   :  { %v1940_v0 = vpop.eup %1939  ;;  %1350 = vst [vmem:[#allocation4 + $0x8] sm:$0xff] %v1938_v59  ;;  %1959 = vrcp.f32 %v1265_v55 }
 0x266   :  { %v1942_v2 = vpop.eup %1941  ;;  %1351 = vst [vmem:[#allocation4 + $0x10] sm:$0xff] %v1940_v0  ;;  %1961 = vpow2.f32 %v1544_v52 }
 0x267   :  { %v1944_v9 = vpop.eup %1943  ;;  %1352 = vst [vmem:[#allocation4 + $0x18] sm:$0xff] %v1942_v2  ;;  %1963 = vpow2.f32 %v1545_v57 }
 0x268   :  { %v1946_v13 = vpop.eup %1945  ;;  %1353 = vst [vmem:[#allocation4 + $0x20] sm:$0xff] %v1944_v9  ;;  %1965 = vpow2.f32 %v1546_v62 }
 0x269   :  { %v1948_v16 = vpop.eup %1947  ;;  %1354 = vst [vmem:[#allocation4 + $0x28] sm:$0xff] %v1946_v13  ;;  %1967 = vpow2.f32 %v1547_v25 }
 0x26a   :  { %v1950_v20 = vpop.eup %1949  ;;  %1355 = vst [vmem:[#allocation4 + $0x30] sm:$0xff] %v1948_v16  ;;  %1969 = vpow2.f32 %v1548_v6 }
 0x26b   :  { %v1952_v28 = vpop.eup %1951  ;;  %1356 = vst [vmem:[#allocation4 + $0x38] sm:$0xff] %v1950_v20  ;;  %1971 = vpow2.f32 %v1549_v12 }
 0x26c   :  { %v1954_v34 = vpop.eup %1953  ;;  %1357 = vst [vmem:[#allocation4 + $0x40] sm:$0xff] %v1952_v28  ;;  %1973 = vpow2.f32 %v1550_v15 }
 0x26d   :  { %v1956_v38 = vpop.eup %1955  ;;  %1358 = vst [vmem:[#allocation4 + $0x48] sm:$0xff] %v1954_v34  ;;  %1975 = vpow2.f32 %v1551_v19  ;;  %v1557_v34 = vmul.f32 -1.442695, %v2644_v17 }
 0x26e   :  { %v1958_v40 = vpop.eup %1957  ;;  %1359 = vst [vmem:[#allocation4 + $0x50] sm:$0xff] %v1956_v38  ;;  %1977 = vpow2.f32 %v1552_v24 }
 0x26f   :  { %v1960_v45 = vpop.eup %1959  ;;  %1360 = vst [vmem:[#allocation4 + $0x58] sm:$0xff] %v1958_v40  ;;  %1979 = vpow2.f32 %v1553_v33 }
 0x270   :  { %v1962_v46 = vpop.eup %1961  ;;  %1361 = vst [vmem:[#allocation4 + $0x60] sm:$0xff] %v1960_v45  ;;  %1981 = vpow2.f32 %v1554_v29 }
 0x271   :  { %v1964_v48 = vpop.eup %1963  ;;  %v1266_v49 = vadd.f32 1.0, %v1962_v46  ;;  %1983 = vpow2.f32 %v1555_v27  ;;  %v1558_v27 = vmul.f32 -1.442695, %v2647_v23  ;;  %v1560_v46 = vmul.f32 -1.442695, %v2653_v36 }
 0x272   :  { %v1966_v51 = vpop.eup %1965  ;;  %v1267_v58 = vadd.f32 1.0, %v1964_v48  ;;  %1985 = vpow2.f32 %v1556_v43  ;;  %v1559_v43 = vmul.f32 -1.442695, %v2650_v31 }
 0x273   :  { %v1968_v52 = vpop.eup %1967  ;;  %1987 = vrcp.f32 %v1266_v49  ;;  %v1268_v54 = vadd.f32 1.0, %v1966_v51  ;;  %v1561_v49 = vmul.f32 -1.442695, %v2656_v39 }
 0x274   :  { %v1970_v55 = vpop.eup %1969  ;;  %1989 = vrcp.f32 %v1267_v58  ;;  %v1269_v57 = vadd.f32 1.0, %v1968_v52  ;;  %v1562_v58 = vmul.f32 -1.442695, %v2659_v42 }
 0x275   :  { %v1972_v59 = vpop.eup %1971  ;;  %1991 = vrcp.f32 %v1268_v54  ;;  %v1270_v62 = vadd.f32 1.0, %v1970_v55 }
 0x276   :  { %v1974_v0 = vpop.eup %1973  ;;  %1993 = vrcp.f32 %v1269_v57  ;;  %v1271_v25 = vadd.f32 1.0, %v1972_v59 }
 0x277   :  { %v1976_v2 = vpop.eup %1975  ;;  %1995 = vrcp.f32 %v1270_v62  ;;  %v1272_v6 = vadd.f32 1.0, %v1974_v0 }
 0x278   :  { %v1978_v9 = vpop.eup %1977  ;;  %1997 = vrcp.f32 %v1271_v25  ;;  %v1273_v12 = vadd.f32 1.0, %v1976_v2 }
 0x279   :  { %v1980_v13 = vpop.eup %1979  ;;  %1999 = vrcp.f32 %v1272_v6  ;;  %v1274_v15 = vadd.f32 1.0, %v1978_v9 }
 0x27a   :  { %v1982_v16 = vpop.eup %1981  ;;  %2001 = vrcp.f32 %v1273_v12  ;;  %v1275_v19 = vadd.f32 1.0, %v1980_v13 }
 0x27b   :  { %v1984_v20 = vpop.eup %1983  ;;  %2003 = vrcp.f32 %v1274_v15  ;;  %v1276_v24 = vadd.f32 1.0, %v1982_v16 }
 0x27c   :  { %v1986_v28 = vpop.eup %1985  ;;  %2005 = vrcp.f32 %v1275_v19  ;;  %v1277_v33 = vadd.f32 1.0, %v1984_v20 }
 0x27d   :  { %v1988_v29 = vpop.eup %1987  ;;  %2007 = vrcp.f32 %v1276_v24  ;;  %v1278_v38 = vadd.f32 1.0, %v1986_v28 }
 0x27e   :  { %v1990_v40 = vpop.eup %1989  ;;  %1362 = vst [vmem:[#allocation4 + $0x68] sm:$0xff] %v1988_v29  ;;  %2009 = vrcp.f32 %v1277_v33 }
 0x27f   :  { %v1992_v45 = vpop.eup %1991  ;;  %1363 = vst [vmem:[#allocation4 + $0x70] sm:$0xff] %v1990_v40  ;;  %2011 = vrcp.f32 %v1278_v38 }
 0x280   :  { %v1994_v48 = vpop.eup %1993  ;;  %1364 = vst [vmem:[#allocation4 + $0x78] sm:$0xff] %v1992_v45  ;;  %2013 = vpow2.f32 %v1557_v34 }
 0x281   :  { %v1996_v51 = vpop.eup %1995  ;;  %1365 = vst [vmem:[#allocation4 + $0x80] sm:$0xff] %v1994_v48  ;;  %2015 = vpow2.f32 %v1558_v27 }
 0x282   :  { %v1998_v52 = vpop.eup %1997  ;;  %1366 = vst [vmem:[#allocation4 + $0x88] sm:$0xff] %v1996_v51  ;;  %2017 = vpow2.f32 %v1559_v43 }
 0x283   :  { %v2000_v54 = vpop.eup %1999  ;;  %1367 = vst [vmem:[#allocation4 + $0x90] sm:$0xff] %v1998_v52  ;;  %2019 = vpow2.f32 %v1560_v46 }
 0x284   :  { %v2002_v55 = vpop.eup %2001  ;;  %1368 = vst [vmem:[#allocation4 + $0x98] sm:$0xff] %v2000_v54  ;;  %2021 = vpow2.f32 %v1561_v49 }
 0x285   :  { %v2004_v57 = vpop.eup %2003  ;;  %1369 = vst [vmem:[#allocation4 + $0xa0] sm:$0xff] %v2002_v55  ;;  %2023 = vpow2.f32 %v1562_v58 }
 0x286   :  { %v2006_v59 = vpop.eup %2005  ;;  %1370 = vst [vmem:[#allocation4 + $0xa8] sm:$0xff] %v2004_v57 }
 0x287   :  { %v2008_v62 = vpop.eup %2007  ;;  %1371 = vst [vmem:[#allocation4 + $0xb0] sm:$0xff] %v2006_v59 }
 0x288   :  { %v2010_v0 = vpop.eup %2009  ;;  %1372 = vst [vmem:[#allocation4 + $0xb8] sm:$0xff] %v2008_v62 }
 0x289   :  { %v2012_v25 = vpop.eup %2011  ;;  %1373 = vst [vmem:[#allocation4 + $0xc0] sm:$0xff] %v2010_v0 }
 0x28a   :  { %v2014_v2 = vpop.eup %2013  ;;  %1374 = vst [vmem:[#allocation4 + $0xc8] sm:$0xff] %v2012_v25 }
 0x28b   :  { %v2016_v6 = vpop.eup %2015  ;;  %v1279_v9 = vadd.f32 1.0, %v2014_v2 }
 0x28c   :  { %v2018_v12 = vpop.eup %2017  ;;  %v1280_v13 = vadd.f32 1.0, %v2016_v6 }
 0x28d   :  { %v2020_v15 = vpop.eup %2019  ;;  %2025 = vrcp.f32 %v1279_v9  ;;  %v1281_v16 = vadd.f32 1.0, %v2018_v12 }
 0x28e   :  { %v2022_v19 = vpop.eup %2021  ;;  %2027 = vrcp.f32 %v1280_v13  ;;  %v1282_v20 = vadd.f32 1.0, %v2020_v15 }
 0x28f   :  { %v2024_v24 = vpop.eup %2023  ;;  %2029 = vrcp.f32 %v1281_v16  ;;  %v1283_v28 = vadd.f32 1.0, %v2022_v19 }
 0x290   :  { %2031 = vrcp.f32 %v1282_v20  ;;  %v1284_v33 = vadd.f32 1.0, %v2024_v24 }
 0x291   :  { %2033 = vrcp.f32 %v1283_v28 }
 0x292   :  { %2035 = vrcp.f32 %v1284_v33 }
 0x297   :  { %v2026_v34 = vpop.eup %2025 }
 0x298   :  { %v2028_v29 = vpop.eup %2027  ;;  %1375 = vst [vmem:[#allocation4 + $0xd0] sm:$0xff] %v2026_v34 }
 0x299   :  { %v2030_v38 = vpop.eup %2029  ;;  %1376 = vst [vmem:[#allocation4 + $0xd8] sm:$0xff] %v2028_v29 }
 0x29a   :  { %v2032_v27 = vpop.eup %2031  ;;  %1377 = vst [vmem:[#allocation4 + $0xe0] sm:$0xff] %v2030_v38 }
 0x29b   :  { %v2034_v40 = vpop.eup %2033  ;;  %1378 = vst [vmem:[#allocation4 + $0xe8] sm:$0xff] %v2032_v27 }
 0x29c   :  { %v2036_v43 = vpop.eup %2035  ;;  %1379 = vst [vmem:[#allocation4 + $0xf0] sm:$0xff] %v2034_v40 }
 0x29d   :  { %1380 = vst [vmem:[#allocation4 + $0xf8] sm:$0xff] %v2036_v43 }
 0x29e PF:  { %p1563_p1 = scmp.ne.s32.totalorder %s2743_s0, 0 }
 0x29f   :  { %1385 = vst [vmem:[#allocation4] sm:$0xff] (!%p1563_p1), %v2566_v60  ;;  %1386 = vst [vmem:[#allocation4 + $0x8] sm:$0xff] (!%p1563_p1), %v2569_v63 }
 0x2a0   :  { %1384 = sbr.rel (%p1563_p1) target bundleno = 687 (0x2af), region = 33  ;;  %1387 = vst [vmem:[#allocation4 + $0x10] sm:$0xff] (!%p1563_p1), %v2572_v1  ;;  %1388 = vst [vmem:[#allocation4 + $0x18] sm:$0xff] (!%p1563_p1), %v2575_v3 }
 0x2a1   :  { %1389 = vst [vmem:[#allocation4 + $0x20] sm:$0xff] (!%p1563_p1), %v2578_v7  ;;  %1390 = vst [vmem:[#allocation4 + $0x28] sm:$0xff] (!%p1563_p1), %v2581_v11 }
 0x2a2   :  { %1391 = vst [vmem:[#allocation4 + $0x30] sm:$0xff] (!%p1563_p1), %v2584_v14  ;;  %1392 = vst [vmem:[#allocation4 + $0x38] sm:$0xff] (!%p1563_p1), %v2587_v30 }
 0x2a3   :  { %1393 = vst [vmem:[#allocation4 + $0x40] sm:$0xff] (!%p1563_p1), %v2590_v18  ;;  %1394 = vst [vmem:[#allocation4 + $0x48] sm:$0xff] (!%p1563_p1), %v2593_v21 }
 0x2a4   :  { %1395 = vst [vmem:[#allocation4 + $0x50] sm:$0xff] (!%p1563_p1), %v2596_v8  ;;  %1396 = vst [vmem:[#allocation4 + $0x58] sm:$0xff] (!%p1563_p1), %v2599_v32 }
 0x2a5   :  { %1397 = vst [vmem:[#allocation4 + $0x60] sm:$0xff] (!%p1563_p1), %v2602_v35  ;;  %1398 = vst [vmem:[#allocation4 + $0x68] sm:$0xff] (!%p1563_p1), %v2605_v37 }
 0x2a6   :  { %1399 = vst [vmem:[#allocation4 + $0x70] sm:$0xff] (!%p1563_p1), %v2608_v26  ;;  %1400 = vst [vmem:[#allocation4 + $0x78] sm:$0xff] (!%p1563_p1), %v2611_v41 }
 0x2a7   :  { %1401 = vst [vmem:[#allocation4 + $0x80] sm:$0xff] %v2614_v44  ;;  %1402 = vst [vmem:[#allocation4 + $0x88] sm:$0xff] %v2617_v47 }
 0x2a8   :  { %1403 = vst [vmem:[#allocation4 + $0x90] sm:$0xff] %v2620_v50  ;;  %1404 = vst [vmem:[#allocation4 + $0x98] sm:$0xff] %v2623_v53 }
 0x2a9   :  { %1405 = vst [vmem:[#allocation4 + $0xa0] sm:$0xff] %v2626_v56  ;;  %1406 = vst [vmem:[#allocation4 + $0xa8] sm:$0xff] %v2629_v61 }
 0x2aa   :  { %1407 = vst [vmem:[#allocation4 + $0xb0] sm:$0xff] %v2632_v22  ;;  %1408 = vst [vmem:[#allocation4 + $0xb8] sm:$0xff] %v2635_v4 }
 0x2ab   :  { %1409 = vst [vmem:[#allocation4 + $0xc0] sm:$0xff] %v2638_v10  ;;  %1410 = vst [vmem:[#allocation4 + $0xc8] sm:$0xff] %v2641_v5 }
 0x2ac   :  { %1411 = vst [vmem:[#allocation4 + $0xd0] sm:$0xff] %v2644_v17  ;;  %1412 = vst [vmem:[#allocation4 + $0xd8] sm:$0xff] %v2647_v23 }
 0x2ad   :  { %1413 = vst [vmem:[#allocation4 + $0xe0] sm:$0xff] %v2650_v31  ;;  %1414 = vst [vmem:[#allocation4 + $0xe8] sm:$0xff] %v2653_v36 }
 0x2ae   :  { %1415 = vst [vmem:[#allocation4 + $0xf0] sm:$0xff] %v2656_v39  ;;  %1416 = vst [vmem:[#allocation4 + $0xf8] sm:$0xff] %v2659_v42 }
 0x2af PF:  { %s2063_s0 = smov [#allocation4]  }
 0x2b0   :  { %s1422_s21 = sshll.u32 %s2063_s0, 4  ;;  %s1423_s21 = int_to_ptr.vmem [resolvable:$true] %s1422_s21 }
 0x2b1   :  { %s2037_s22 = scalar_lea.vmem %s1423_s21, 4096  ;;  %p2042_p3 = scmp.lt.s32.totalorder %s1423_s21, %s1423_s21 }
 0x2b2   :  { %p2038_p2 = scmp.ne.s32.totalorder %s1423_s21, %s2037_s22  ;;  %p2043_p4 = scmp.lt.s32.totalorder %s2037_s22, %s2037_s22 }
 0x2b4   :  { %p2044_p5 = por %p2043_p4, %p2042_p3 }
 0x2b6   :  { %p2045_p6 = pnand %p2044_p5, %p2038_p2 }
 0x2b8   :  { %2048 = shalt.err (!%p2045_p6)
}
 0x2b9   :  { %s2049_s25 = scalar_lea.hbm %s2750_s7, 4096 }
 0x2ba   :  { %p2050_p7 = scmp.ne.s32.totalorder %s2750_s7, %s2049_s25  ;;  %p2053_p8 = scmp.lt.u32.totalorder %s2049_s25, %s2750_s7 }
 0x2bc   :  { %p2055_p9 = pnand %p2053_p8, %p2050_p7 }
 0x2be   :  { %2058 = shalt.err (!%p2055_p9)
}
 0x2bf   :  { %s2064_s30 = smov 128   ;;  %s2065_s8 = smov 8  }
 0x2c0   :  { %1428 = dma.vmem_to_hbm [thread:$0]  %s1423_s21, 4096, %s2750_s7, [#allocation5], %s2064_s30, %s2064_s30, %s2065_s8  }
 0x2c1   :  { %2059 = dma.done.wait [#allocation5], 4096  }
 0x2c2   :  { %2060 = vsyncadd [#allocation5], 4294963200 }
 0x2c3   :  { %1432 = vsyncpa [#allocation5], 1 }

</bundles_post_ra>
